<compile_context>
chip_gen: v7x
topology: tpu7x:2x2x1
jax: 0.10.0
libtpu: 0.0.40
codegen_flags: <defaults>
</compile_context>

<pallas_src>
import math
import numpy as np
import jax
import jax.numpy as jnp
from jax import lax
from jax.experimental import pallas as pl
from jax.experimental.pallas import tpu as pltpu


# ----------------------------------------------------------------------------
# Pallas kernel factory: one ConvGRU layer, grid = (B, T).
# Refs (batch/time dims squeezed by BlockSpec):
#   xcols_ref : (Kx, HW)    im2col of the input frame (taps folded into rows)
#   wx_ref    : (3Ch, Kx)   [gates-x (2Ch rows) | candidate-x (Ch rows)] weights
#   wgh_ref   : (2Ch, 9Ch)  gates h-part weights
#   wch_ref   : (Ch, 9Ch)   candidate (r*h)-part weights
#   bg_ref    : (2Ch, 1)    gates bias
#   bc_ref    : (Ch, 1)     candidate bias
#   out_ref   : (Ch, HW)    next hidden state (lane-dense)
#   h_state   : VMEM scratch (Ch, HW) f32 — hidden state carried across the T grid axis
# ----------------------------------------------------------------------------
def _make_cell_kernel(H, W, kh, kw, Ch):
    HW = H * W
    ph, pw = kh // 2, kw // 2

    def kernel(xcols_ref, wx_ref, wgh_ref, wch_ref, bg_ref, bc_ref,
               out_ref, h_state):
        # re-init hidden state at the start of each batch element's sequence
        @pl.when(pl.program_id(1) == 0)
        def _():
            h_state[...] = jnp.zeros_like(h_state)

        h = h_state[...]                                       # (Ch, HW) f32

        # lane position within a row, for column-boundary masking of the taps
        xcol = lax.broadcasted_iota(jnp.int32, (1, HW), 1) % W

        def im2col(a):
            # a: (C, HW) row-major flattened image -> (kh*kw*C, HW) tap-major rows.
            # Tap (ki,kj) needs a[:, f + di*W + dj] with zeros outside the image.
            slabs = []
            for ki in range(kh):
                for kj in range(kw):
                    di, dj = ki - ph, kj - pw
                    d = di * W + dj
                    if d == 0:
                        s = a
                    elif d > 0:
                        s = jnp.concatenate(
                            [a[:, d:], jnp.zeros((a.shape[0], d), a.dtype)], axis=1)
                    else:
                        s = jnp.concatenate(
                            [jnp.zeros((a.shape[0], -d), a.dtype), a[:, :HW + d]],
                            axis=1)
                    # flat shift already zero-fills the top/bottom rows; only the
                    # row-wrap leakage from the column offset needs masking.
                    if dj > 0:
                        s = jnp.where(xcol < (W - dj), s, 0.0)
                    elif dj < 0:
                        s = jnp.where(xcol >= (-dj), s, 0.0)
                    slabs.append(s)
            return jnp.concatenate(slabs, axis=0)

        h_cols = im2col(h)                                     # (9Ch, HW)

        # all x-driven terms (gates + candidate) in one MXU matmul, issued
        # before the sigmoid dependency
        xc = jnp.dot(wx_ref[...], xcols_ref[...],
                     preferred_element_type=jnp.float32)       # (3Ch, HW)
        gh = jnp.dot(wgh_ref[...], h_cols,
                     preferred_element_type=jnp.float32)       # (2Ch, HW)

        gates = xc[:2 * Ch] + gh + bg_ref[...]
        reset_gate = jax.nn.sigmoid(gates[:Ch])                # gamma
        update_gate = jax.nn.sigmoid(gates[Ch:])               # beta

        rh_cols = im2col(reset_gate * h)                       # (9Ch, HW)
        cc = jnp.dot(wch_ref[...], rh_cols,
                     preferred_element_type=jnp.float32)       # (Ch, HW)
        cnm = jnp.tanh(xc[2 * Ch:] + cc + bc_ref[...])

        h_next = (1.0 - update_gate) * h + update_gate * cnm
        h_state[...] = h_next
        out_ref[...] = h_next.astype(out_ref.dtype)

    return kernel


# ----------------------------------------------------------------------------
# Wrapper-side im2col for the (known-ahead-of-time) input frames.
# x: (B, T, C, H, W) -> (B, T, kh*kw*C, H*W) with row index = tap*C + c
# ----------------------------------------------------------------------------
def _im2col_x(x, kh, kw):
    B, T, C, H, W = x.shape
    ph, pw = kh // 2, kw // 2
    xp = jnp.pad(x, ((0, 0), (0, 0), (0, 0), (ph, ph), (pw, pw)))
    slabs = []
    for ki in range(kh):
        for kj in range(kw):
            slabs.append(xp[:, :, :, ki:ki + H, kj:kj + W].reshape(B, T, C, H * W))
    return jnp.concatenate(slabs, axis=2)


# ----------------------------------------------------------------------------
# One ConvGRU layer over the whole (B, T) sequence in a single pallas_call.
# x: (B, T, Cin, H, W)  ->  (B, T, Ch, H*W)
# ----------------------------------------------------------------------------
def convgru_layer(x, p):
    B, T, Cin, H, W = x.shape
    Ch = p["hidden_dim"]
    kh, kw = p["kernel_size"]
    HW = H * W

    x_cols = _im2col_x(x, kh, kw)                     # (B, T, 9*Cin, HW)
    Kx = kh * kw * Cin
    Kxp = p["wx"].shape[1]                            # K padded to a multiple of 8
    if Kxp != Kx:
        x_cols = jnp.pad(x_cols, ((0, 0), (0, 0), (0, Kxp - Kx), (0, 0)))
    Kh = kh * kw * Ch

    kernel = _make_cell_kernel(H, W, kh, kw, Ch)

    return pl.pallas_call(
        kernel,
        out_shape=jax.ShapeDtypeStruct((B, T, Ch, HW), x.dtype),
        grid=(B, T),
        in_specs=[
            pl.BlockSpec((None, None, Kxp, HW), lambda b, t: (b, t, 0, 0)),
            pl.BlockSpec((3 * Ch, Kxp), lambda b, t: (0, 0)),
            pl.BlockSpec((2 * Ch, Kh), lambda b, t: (0, 0)),
            pl.BlockSpec((Ch, Kh), lambda b, t: (0, 0)),
            pl.BlockSpec((2 * Ch, 1), lambda b, t: (0, 0)),
            pl.BlockSpec((Ch, 1), lambda b, t: (0, 0)),
        ],
        out_specs=pl.BlockSpec((None, None, Ch, HW), lambda b, t: (b, t, 0, 0)),
        scratch_shapes=[pltpu.VMEM((Ch, HW), jnp.float32)],
        compiler_params=pltpu.CompilerParams(
            dimension_semantics=("parallel", "arbitrary")),
    )(x_cols, p["wx"], p["wgh"], p["wch"], p["bg"], p["bc"])


# ----------------------------------------------------------------------------
# ConvGRU forward (matches the PyTorch module's semantics).
# input_tensor: (t, b, c, h, w) if not batch_first else (b, t, c, h, w), NCHW frames.
# Returns (layer_output_list, last_state_list) in NCHW, like the PyTorch module.
# ----------------------------------------------------------------------------
def convgru_forward(input_tensor, layer_params, batch_first=False,
                    return_all_layers=False):
    if not batch_first:
        input_tensor = jnp.transpose(input_tensor, (1, 0, 2, 3, 4))  # -> (b,t,c,h,w)
    B, T, C, H, W = input_tensor.shape
    cur = input_tensor

    layer_output_list, last_state_list = [], []
    for p in layer_params:
        Ch = p["hidden_dim"]
        out_flat = convgru_layer(cur, p)                # (B, T, Ch, H*W)
        cur = out_flat.reshape(B, T, Ch, H, W)          # NCHW frames
        layer_output_list.append(cur)
        last_state_list.append([cur[:, -1]])            # (B, Ch, H, W)

    if not return_all_layers:
        layer_output_list = layer_output_list[-1:]
        last_state_list = last_state_list[-1:]
    return layer_output_list, last_state_list


# ----------------------------------------------------------------------------
# Deterministic parameter init (PyTorch Conv2d-style uniform bounds) plus the
# pre-flattened weight matrices the kernel consumes, and a pure-JAX reference.
# ----------------------------------------------------------------------------
def make_layer_params(key, input_dim, hidden_dim, kernel_size):
    kh, kw = kernel_size
    cin_total = input_dim + hidden_dim
    kg, kgb, kc, kcb = jax.random.split(key, 4)
    bound = 1.0 / math.sqrt(cin_total * kh * kw)
    w_gates = jax.random.uniform(kg, (2 * hidden_dim, cin_total, kh, kw),
                                 jnp.float32, -bound, bound)   # OIHW
    b_gates = jax.random.uniform(kgb, (2 * hidden_dim,), jnp.float32, -bound, bound)
    w_can = jax.random.uniform(kc, (hidden_dim, cin_total, kh, kw),
                               jnp.float32, -bound, bound)     # OIHW
    b_can = jax.random.uniform(kcb, (hidden_dim,), jnp.float32, -bound, bound)

    def to_mat(w, lo, hi):
        # OIHW, input channels [lo:hi] -> (O, kh*kw*(hi-lo)), column = tap*(hi-lo)+c
        ws = jnp.transpose(w[:, lo:hi], (0, 2, 3, 1))
        return ws.reshape(w.shape[0], -1)

    wgx = to_mat(w_gates, 0, input_dim)                 # (2Ch, 9*Cin)
    wgh = to_mat(w_gates, input_dim, cin_total)         # (2Ch, 9*Ch)
    wcx = to_mat(w_can, 0, input_dim)                   # (Ch, 9*Cin)
    wch = to_mat(w_can, input_dim, cin_total)           # (Ch, 9*Ch)
    wx = jnp.concatenate([wgx, wcx], axis=0)            # (3Ch, 9*Cin)

    Kx = kh * kw * input_dim
    Kxp = ((Kx + 7) // 8) * 8                           # pad K to a multiple of 8
    if Kxp != Kx:
        wx = jnp.pad(wx, ((0, 0), (0, Kxp - Kx)))

    return {
        "hidden_dim": hidden_dim,
        "kernel_size": (kh, kw),
        "input_dim": input_dim,
        "wx": wx, "wgh": wgh, "wch": wch,
        "bg": b_gates.reshape(2 * hidden_dim, 1),
        "bc": b_can.reshape(hidden_dim, 1),
        # originals kept for the pure-JAX reference path
        "w_gates": w_gates, "b_gates": b_gates, "w_can": w_can, "b_can": b_can,
    }


def _ref_cell(x, h, p):  # x, h: NCHW
    combined = jnp.concatenate([x, h], axis=1)
    gates = lax.conv_general_dilated(
        combined, p["w_gates"], (1, 1), "SAME",
        dimension_numbers=("NCHW", "OIHW", "NCHW")) + p["b_gates"][None, :, None, None]
    hd = p["hidden_dim"]
    gamma, beta = gates[:, :hd], gates[:, hd:]
    reset_gate = jax.nn.sigmoid(gamma)
    update_gate = jax.nn.sigmoid(beta)
    combined2 = jnp.concatenate([x, reset_gate * h], axis=1)
    cc = lax.conv_general_dilated(
        combined2, p["w_can"], (1, 1), "SAME",
        dimension_numbers=("NCHW", "OIHW", "NCHW")) + p["b_can"][None, :, None, None]
    cnm = jnp.tanh(cc)
    return (1.0 - update_gate) * h + update_gate * cnm


def convgru_forward_ref(input_tensor, layer_params, batch_first=False,
                        return_all_layers=False):
    if not batch_first:
        input_tensor = jnp.transpose(input_tensor, (1, 0, 2, 3, 4))
    B, T, C, H, W = input_tensor.shape
    cur = input_tensor
    layer_output_list, last_state_list = [], []
    for p in layer_params:
        h = jnp.zeros((B, p["hidden_dim"], H, W), cur.dtype)
        outs = []
        for t in range(T):
            h = _ref_cell(cur[:, t], h, p)
            outs.append(h)
        cur = jnp.stack(outs, axis=1)
        layer_output_list.append(cur)
        last_state_list.append([h])
    if not return_all_layers:
        layer_output_list = layer_output_list[-1:]
        last_state_list = last_state_list[-1:]
    return layer_output_list, last_state_list


if __name__ == "__main__":
    # ConvGRU(input_size=(16,16), input_dim=4, hidden_dim=16, kernel_size=(3,3),
    #         num_layers=2, batch_first=False, bias=True)
    B, T, Cin, H, W = 2, 4, 4, 16, 16
    hidden_dims = [16, 16]
    kernel_size = (3, 3)

    key = jax.random.PRNGKey(0)
    k_in, k_p0, k_p1 = jax.random.split(key, 3)

    # input layout (t, b, c, h, w) since batch_first=False
    x = jax.random.normal(k_in, (T, B, Cin, H, W), jnp.float32)

    layer_params = [
        make_layer_params(k_p0, Cin, hidden_dims[0], kernel_size),
        make_layer_params(k_p1, hidden_dims[0], hidden_dims[1], kernel_size),
    ]

    layer_out, last_state = convgru_forward(x, layer_params,
                                            batch_first=False,
                                            return_all_layers=False)
    out = jax.block_until_ready(layer_out[0])
    h_last = jax.block_until_ready(last_state[0][0])

    # verify against pure-JAX reference of the PyTorch math
    ref_out, ref_last = convgru_forward_ref(x, layer_params,
                                            batch_first=False,
                                            return_all_layers=False)
    np.testing.assert_allclose(np.asarray(out), np.asarray(ref_out[0]),
                               rtol=1e-4, atol=1e-4)
    np.testing.assert_allclose(np.asarray(h_last), np.asarray(ref_last[0][0]),
                               rtol=1e-4, atol=1e-4)

    assert out.shape == (B, T, hidden_dims[-1], H, W)
    assert h_last.shape == (B, hidden_dims[-1], H, W)
    print("KERNEL_OK")
</pallas_src>

<mosaic_0001>
module attributes {stable_mosaic.version = 11 : i64} {
  func.func @kernel(%arg0: i32, %arg1: i32, %arg2: memref<1x1x40x256xf32, #tpu.memory_space<vmem>>, %arg3: memref<48x40xf32, #tpu.memory_space<vmem>>, %arg4: memref<32x144xf32, #tpu.memory_space<vmem>>, %arg5: memref<16x144xf32, #tpu.memory_space<vmem>>, %arg6: memref<32x1xf32, #tpu.memory_space<vmem>>, %arg7: memref<16x1xf32, #tpu.memory_space<vmem>>, %arg8: memref<1x1x16x256xf32, #tpu.memory_space<vmem>>, %arg9: memref<16x256xf32, #tpu.memory_space<vmem>>) attributes {dimension_semantics = [#tpu.dimension_semantics<parallel>, #tpu.dimension_semantics<arbitrary>], iteration_bounds = array<i64: 2, 4>, scalar_prefetch = 0 : i64, scratch_operands = 1 : i64, tpu.core_type = #tpu.core_type<tc>, window_params = [{transform_indices = @transform_0, window_bounds = array<i64: 1, 1, 40, 256>}, {pipeline_mode = #tpu.pipeline_mode<synchronous>, transform_indices = @transform_1, window_bounds = array<i64: 48, 40>}, {pipeline_mode = #tpu.pipeline_mode<synchronous>, transform_indices = @transform_2, window_bounds = array<i64: 32, 144>}, {pipeline_mode = #tpu.pipeline_mode<synchronous>, transform_indices = @transform_3, window_bounds = array<i64: 16, 144>}, {pipeline_mode = #tpu.pipeline_mode<synchronous>, transform_indices = @transform_4, window_bounds = array<i64: 32, 1>}, {pipeline_mode = #tpu.pipeline_mode<synchronous>, transform_indices = @transform_5, window_bounds = array<i64: 16, 1>}, {transform_indices = @transform_6, window_bounds = array<i64: 1, 1, 16, 256>}]} {
    %c0_i32 = arith.constant 0 : i32
    %0 = arith.cmpi eq, %arg1, %c0_i32 : i32
    %1 = arith.extui %0 : i1 to i32
    %c0_i32_0 = arith.constant 0 : i32
    %2 = arith.cmpi ne, %1, %c0_i32_0 : i32
    scf.if %2 {
      %cst_70 = arith.constant 0.000000e+00 : f32
      %184 = vector.broadcast %cst_70 : f32 to vector<16x256xf32>
      %c0_71 = arith.constant 0 : index
      %c0_72 = arith.constant 0 : index
      %185 = vector.load %arg9[%c0_71, %c0_72] : memref<16x256xf32, #tpu.memory_space<vmem>>, vector<16x256xf32>
      tpu.vector_store %arg9[%c0_71, %c0_72], %184 {strides = array<i32>} : memref<16x256xf32, #tpu.memory_space<vmem>>, vector<16x256xf32>,
    } else {
    }
    %c0 = arith.constant 0 : index
    %c0_1 = arith.constant 0 : index
    %3 = vector.load %arg9[%c0, %c0_1] : memref<16x256xf32, #tpu.memory_space<vmem>>, vector<16x256xf32>
    %4 = tpu.iota {dimensions = array<i32: 1>} : vector<1x256xi32>
    %c16_i32 = arith.constant 16 : i32
    %c0_i32_2 = arith.constant 0 : i32
    %5 = arith.cmpi eq, %c16_i32, %c0_i32_2 : i32
    %c1_i32 = arith.constant 1 : i32
    %6 = arith.select %5, %c1_i32, %c16_i32 : i32
    %7 = vector.broadcast %6 : i32 to vector<1x256xi32>
    %8 = arith.remsi %4, %7 : vector<1x256xi32>
    %c0_i32_3 = arith.constant 0 : i32
    %9 = vector.broadcast %c0_i32_3 : i32 to vector<1x256xi32>
    %10 = arith.cmpi ne, %8, %9 : vector<1x256xi32>
    %c0_i32_4 = arith.constant 0 : i32
    %11 = vector.broadcast %c0_i32_4 : i32 to vector<1x256xi32>
    %12 = arith.cmpi slt, %8, %11 : vector<1x256xi32>
    %c0_i32_5 = arith.constant 0 : i32
    %13 = arith.cmpi slt, %6, %c0_i32_5 : i32
    %14 = vector.broadcast %13 : i1 to vector<1x256xi1>
    %15 = vector.broadcast %14 : vector<1x256xi1> to vector<1x256xi1>
    %16 = arith.xori %12, %15 : vector<1x256xi1>
    %17 = arith.andi %16, %10 : vector<1x256xi1>
    %18 = vector.broadcast %6 : i32 to vector<1x256xi32>
    %19 = arith.addi %8, %18 : vector<1x256xi32>
    %20 = arith.select %17, %19, %8 : vector<1x256xi1>, vector<1x256xi32>
    %cst = arith.constant 0.000000e+00 : f32
    %21 = vector.broadcast %cst : f32 to vector<16x17xf32>
    %22 = vector.extract_strided_slice %3 {offsets = [0, 0], sizes = [16, 239], strides = [1, 1]} : vector<16x256xf32> to vector<16x239xf32>
    %23 = tpu.concatenate %21, %22 in 1 : vector<16x17xf32>, vector<16x239xf32> -> vector<16x256xf32>
    %c1_i32_6 = arith.constant 1 : i32
    %24 = vector.broadcast %c1_i32_6 : i32 to vector<1x256xi32>
    %25 = arith.cmpi sge, %20, %24 : vector<1x256xi32>
    %cst_7 = arith.constant 0.000000e+00 : f32
    %26 = vector.shape_cast %25 : vector<1x256xi1> to vector<1x256xi1>
    %27 = vector.broadcast %26 : vector<1x256xi1> to vector<16x256xi1>
    %28 = vector.broadcast %cst_7 : f32 to vector<16x256xf32>
    %29 = arith.select %27, %23, %28 : vector<16x256xi1>, vector<16x256xf32>
    %cst_8 = arith.constant 0.000000e+00 : f32
    %30 = vector.broadcast %cst_8 : f32 to vector<16x16xf32>
    %31 = vector.extract_strided_slice %3 {offsets = [0, 0], sizes = [16, 240], strides = [1, 1]} : vector<16x256xf32> to vector<16x240xf32>
    %32 = tpu.concatenate %30, %31 in 1 : vector<16x16xf32>, vector<16x240xf32> -> vector<16x256xf32>
    %cst_9 = arith.constant 0.000000e+00 : f32
    %33 = vector.broadcast %cst_9 : f32 to vector<16x15xf32>
    %34 = vector.extract_strided_slice %3 {offsets = [0, 0], sizes = [16, 241], strides = [1, 1]} : vector<16x256xf32> to vector<16x241xf32>
    %35 = tpu.concatenate %33, %34 in 1 : vector<16x15xf32>, vector<16x241xf32> -> vector<16x256xf32>
    %c15_i32 = arith.constant 15 : i32
    %36 = vector.broadcast %c15_i32 : i32 to vector<1x256xi32>
    %37 = arith.cmpi slt, %20, %36 : vector<1x256xi32>
    %cst_10 = arith.constant 0.000000e+00 : f32
    %38 = vector.shape_cast %37 : vector<1x256xi1> to vector<1x256xi1>
    %39 = vector.broadcast %38 : vector<1x256xi1> to vector<16x256xi1>
    %40 = vector.broadcast %cst_10 : f32 to vector<16x256xf32>
    %41 = arith.select %39, %35, %40 : vector<16x256xi1>, vector<16x256xf32>
    %cst_11 = arith.constant 0.000000e+00 : f32
    %42 = vector.broadcast %cst_11 : f32 to vector<16x1xf32>
    %43 = vector.extract_strided_slice %3 {offsets = [0, 0], sizes = [16, 255], strides = [1, 1]} : vector<16x256xf32> to vector<16x255xf32>
    %44 = tpu.concatenate %42, %43 in 1 : vector<16x1xf32>, vector<16x255xf32> -> vector<16x256xf32>
    %c1_i32_12 = arith.constant 1 : i32
    %45 = vector.broadcast %c1_i32_12 : i32 to vector<1x256xi32>
    %46 = arith.cmpi sge, %20, %45 : vector<1x256xi32>
    %cst_13 = arith.constant 0.000000e+00 : f32
    %47 = vector.shape_cast %46 : vector<1x256xi1> to vector<1x256xi1>
    %48 = vector.broadcast %47 : vector<1x256xi1> to vector<16x256xi1>
    %49 = vector.broadcast %cst_13 : f32 to vector<16x256xf32>
    %50 = arith.select %48, %44, %49 : vector<16x256xi1>, vector<16x256xf32>
    %51 = vector.extract_strided_slice %3 {offsets = [0, 1], sizes = [16, 255], strides = [1, 1]} : vector<16x256xf32> to vector<16x255xf32>
    %cst_14 = arith.constant 0.000000e+00 : f32
    %52 = vector.broadcast %cst_14 : f32 to vector<16x1xf32>
    %53 = tpu.concatenate %51, %52 in 1 : vector<16x255xf32>, vector<16x1xf32> -> vector<16x256xf32>
    %c15_i32_15 = arith.constant 15 : i32
    %54 = vector.broadcast %c15_i32_15 : i32 to vector<1x256xi32>
    %55 = arith.cmpi slt, %20, %54 : vector<1x256xi32>
    %cst_16 = arith.constant 0.000000e+00 : f32
    %56 = vector.shape_cast %55 : vector<1x256xi1> to vector<1x256xi1>
    %57 = vector.broadcast %56 : vector<1x256xi1> to vector<16x256xi1>
    %58 = vector.broadcast %cst_16 : f32 to vector<16x256xf32>
    %59 = arith.select %57, %53, %58 : vector<16x256xi1>, vector<16x256xf32>
    %60 = vector.extract_strided_slice %3 {offsets = [0, 15], sizes = [16, 241], strides = [1, 1]} : vector<16x256xf32> to vector<16x241xf32>
    %cst_17 = arith.constant 0.000000e+00 : f32
    %61 = vector.broadcast %cst_17 : f32 to vector<16x15xf32>
    %62 = tpu.concatenate %60, %61 in 1 : vector<16x241xf32>, vector<16x15xf32> -> vector<16x256xf32>
    %c1_i32_18 = arith.constant 1 : i32
    %63 = vector.broadcast %c1_i32_18 : i32 to vector<1x256xi32>
    %64 = arith.cmpi sge, %20, %63 : vector<1x256xi32>
    %cst_19 = arith.constant 0.000000e+00 : f32
    %65 = vector.shape_cast %64 : vector<1x256xi1> to vector<1x256xi1>
    %66 = vector.broadcast %65 : vector<1x256xi1> to vector<16x256xi1>
    %67 = vector.broadcast %cst_19 : f32 to vector<16x256xf32>
    %68 = arith.select %66, %62, %67 : vector<16x256xi1>, vector<16x256xf32>
    %69 = vector.extract_strided_slice %3 {offsets = [0, 16], sizes = [16, 240], strides = [1, 1]} : vector<16x256xf32> to vector<16x240xf32>
    %cst_20 = arith.constant 0.000000e+00 : f32
    %70 = vector.broadcast %cst_20 : f32 to vector<16x16xf32>
    %71 = tpu.concatenate %69, %70 in 1 : vector<16x240xf32>, vector<16x16xf32> -> vector<16x256xf32>
    %72 = vector.extract_strided_slice %3 {offsets = [0, 17], sizes = [16, 239], strides = [1, 1]} : vector<16x256xf32> to vector<16x239xf32>
    %cst_21 = arith.constant 0.000000e+00 : f32
    %73 = vector.broadcast %cst_21 : f32 to vector<16x17xf32>
    %74 = tpu.concatenate %72, %73 in 1 : vector<16x239xf32>, vector<16x17xf32> -> vector<16x256xf32>
    %c15_i32_22 = arith.constant 15 : i32
    %75 = vector.broadcast %c15_i32_22 : i32 to vector<1x256xi32>
    %76 = arith.cmpi slt, %20, %75 : vector<1x256xi32>
    %cst_23 = arith.constant 0.000000e+00 : f32
    %77 = vector.shape_cast %76 : vector<1x256xi1> to vector<1x256xi1>
    %78 = vector.broadcast %77 : vector<1x256xi1> to vector<16x256xi1>
    %79 = vector.broadcast %cst_23 : f32 to vector<16x256xf32>
    %80 = arith.select %78, %74, %79 : vector<16x256xi1>, vector<16x256xf32>
    %81 = tpu.concatenate %29, %32, %41, %50, %3, %59, %68, %71, %80 in 0 : vector<16x256xf32>, vector<16x256xf32>, vector<16x256xf32>, vector<16x256xf32>, vector<16x256xf32>, vector<16x256xf32>, vector<16x256xf32>, vector<16x256xf32>, vector<16x256xf32> -> vector<144x256xf32>
    %c0_24 = arith.constant 0 : index
    %c0_25 = arith.constant 0 : index
    %82 = vector.load %arg3[%c0_24, %c0_25] : memref<48x40xf32, #tpu.memory_space<vmem>>, vector<48x40xf32>
    %c0_26 = arith.constant 0 : index
    %c0_27 = arith.constant 0 : index
    %c0_28 = arith.constant 0 : index
    %c0_29 = arith.constant 0 : index
    %83 = vector.load %arg2[%c0_26, %c0_27, %c0_28, %c0_29] : memref<1x1x40x256xf32, #tpu.memory_space<vmem>>, vector<1x1x40x256xf32>
    %84 = vector.shape_cast %83 : vector<1x1x40x256xf32> to vector<40x256xf32>
    %cst_30 = arith.constant dense<0.000000e+00> : vector<48x256xf32>
    %85 = tpu.matmul %82, %84, %cst_30 {dimension_numbers = #tpu.dot_dimension_numbers<[1], [0], [0], [1], [0, 0, 1, 1], [], []>} : vector<48x40xf32>, vector<40x256xf32>, vector<48x256xf32> -> vector<48x256xf32>
    %c0_31 = arith.constant 0 : index
    %c0_32 = arith.constant 0 : index
    %86 = vector.load %arg4[%c0_31, %c0_32] : memref<32x144xf32, #tpu.memory_space<vmem>>, vector<32x144xf32>
    %cst_33 = arith.constant dense<0.000000e+00> : vector<32x256xf32>
    %87 = tpu.matmul %86, %81, %cst_33 {dimension_numbers = #tpu.dot_dimension_numbers<[1], [0], [0], [1], [0, 0, 1, 1], [], []>} : vector<32x144xf32>, vector<144x256xf32>, vector<32x256xf32> -> vector<32x256xf32>
    %88 = vector.extract_strided_slice %85 {offsets = [0, 0], sizes = [32, 256], strides = [1, 1]} : vector<48x256xf32> to vector<32x256xf32>
    %89 = arith.addf %88, %87 : vector<32x256xf32>
    %c0_34 = arith.constant 0 : index
    %c0_35 = arith.constant 0 : index
    %90 = vector.load %arg6[%c0_34, %c0_35] : memref<32x1xf32, #tpu.memory_space<vmem>>, vector<32x1xf32>
    %91 = vector.broadcast %90 : vector<32x1xf32> to vector<32x256xf32>
    %92 = arith.addf %89, %91 : vector<32x256xf32>
    %93 = vector.extract_strided_slice %92 {offsets = [0, 0], sizes = [16, 256], strides = [1, 1]} : vector<32x256xf32> to vector<16x256xf32>
    %94 = arith.negf %93 : vector<16x256xf32>
    %95 = math.exp %94 : vector<16x256xf32>
    %cst_36 = arith.constant 1.000000e+00 : f32
    %96 = vector.broadcast %cst_36 : f32 to vector<16x256xf32>
    %97 = arith.addf %96, %95 : vector<16x256xf32>
    %98 = arith.divf %96, %97 : vector<16x256xf32>
    %99 = vector.extract_strided_slice %92 {offsets = [16, 0], sizes = [16, 256], strides = [1, 1]} : vector<32x256xf32> to vector<16x256xf32>
    %100 = arith.negf %99 : vector<16x256xf32>
    %101 = math.exp %100 : vector<16x256xf32>
    %cst_37 = arith.constant 1.000000e+00 : f32
    %102 = vector.broadcast %cst_37 : f32 to vector<16x256xf32>
    %103 = arith.addf %102, %101 : vector<16x256xf32>
    %104 = arith.divf %102, %103 : vector<16x256xf32>
    %105 = arith.mulf %98, %3 : vector<16x256xf32>
    %cst_38 = arith.constant 0.000000e+00 : f32
    %106 = vector.broadcast %cst_38 : f32 to vector<16x17xf32>
    %107 = vector.extract_strided_slice %105 {offsets = [0, 0], sizes = [16, 239], strides = [1, 1]} : vector<16x256xf32> to vector<16x239xf32>
    %108 = tpu.concatenate %106, %107 in 1 : vector<16x17xf32>, vector<16x239xf32> -> vector<16x256xf32>
    %c1_i32_39 = arith.constant 1 : i32
    %109 = vector.broadcast %c1_i32_39 : i32 to vector<1x256xi32>
    %110 = arith.cmpi sge, %20, %109 : vector<1x256xi32>
    %cst_40 = arith.constant 0.000000e+00 : f32
    %111 = vector.shape_cast %110 : vector<1x256xi1> to vector<1x256xi1>
    %112 = vector.broadcast %111 : vector<1x256xi1> to vector<16x256xi1>
    %113 = vector.broadcast %cst_40 : f32 to vector<16x256xf32>
    %114 = arith.select %112, %108, %113 : vector<16x256xi1>, vector<16x256xf32>
    %cst_41 = arith.constant 0.000000e+00 : f32
    %115 = vector.broadcast %cst_41 : f32 to vector<16x16xf32>
    %116 = vector.extract_strided_slice %105 {offsets = [0, 0], sizes = [16, 240], strides = [1, 1]} : vector<16x256xf32> to vector<16x240xf32>
    %117 = tpu.concatenate %115, %116 in 1 : vector<16x16xf32>, vector<16x240xf32> -> vector<16x256xf32>
    %cst_42 = arith.constant 0.000000e+00 : f32
    %118 = vector.broadcast %cst_42 : f32 to vector<16x15xf32>
    %119 = vector.extract_strided_slice %105 {offsets = [0, 0], sizes = [16, 241], strides = [1, 1]} : vector<16x256xf32> to vector<16x241xf32>
    %120 = tpu.concatenate %118, %119 in 1 : vector<16x15xf32>, vector<16x241xf32> -> vector<16x256xf32>
    %c15_i32_43 = arith.constant 15 : i32
    %121 = vector.broadcast %c15_i32_43 : i32 to vector<1x256xi32>
    %122 = arith.cmpi slt, %20, %121 : vector<1x256xi32>
    %cst_44 = arith.constant 0.000000e+00 : f32
    %123 = vector.shape_cast %122 : vector<1x256xi1> to vector<1x256xi1>
    %124 = vector.broadcast %123 : vector<1x256xi1> to vector<16x256xi1>
    %125 = vector.broadcast %cst_44 : f32 to vector<16x256xf32>
    %126 = arith.select %124, %120, %125 : vector<16x256xi1>, vector<16x256xf32>
    %cst_45 = arith.constant 0.000000e+00 : f32
    %127 = vector.broadcast %cst_45 : f32 to vector<16x1xf32>
    %128 = vector.extract_strided_slice %105 {offsets = [0, 0], sizes = [16, 255], strides = [1, 1]} : vector<16x256xf32> to vector<16x255xf32>
    %129 = tpu.concatenate %127, %128 in 1 : vector<16x1xf32>, vector<16x255xf32> -> vector<16x256xf32>
    %c1_i32_46 = arith.constant 1 : i32
    %130 = vector.broadcast %c1_i32_46 : i32 to vector<1x256xi32>
    %131 = arith.cmpi sge, %20, %130 : vector<1x256xi32>
    %cst_47 = arith.constant 0.000000e+00 : f32
    %132 = vector.shape_cast %131 : vector<1x256xi1> to vector<1x256xi1>
    %133 = vector.broadcast %132 : vector<1x256xi1> to vector<16x256xi1>
    %134 = vector.broadcast %cst_47 : f32 to vector<16x256xf32>
    %135 = arith.select %133, %129, %134 : vector<16x256xi1>, vector<16x256xf32>
    %136 = vector.extract_strided_slice %105 {offsets = [0, 1], sizes = [16, 255], strides = [1, 1]} : vector<16x256xf32> to vector<16x255xf32>
    %cst_48 = arith.constant 0.000000e+00 : f32
    %137 = vector.broadcast %cst_48 : f32 to vector<16x1xf32>
    %138 = tpu.concatenate %136, %137 in 1 : vector<16x255xf32>, vector<16x1xf32> -> vector<16x256xf32>
    %c15_i32_49 = arith.constant 15 : i32
    %139 = vector.broadcast %c15_i32_49 : i32 to vector<1x256xi32>
    %140 = arith.cmpi slt, %20, %139 : vector<1x256xi32>
    %cst_50 = arith.constant 0.000000e+00 : f32
    %141 = vector.shape_cast %140 : vector<1x256xi1> to vector<1x256xi1>
    %142 = vector.broadcast %141 : vector<1x256xi1> to vector<16x256xi1>
    %143 = vector.broadcast %cst_50 : f32 to vector<16x256xf32>
    %144 = arith.select %142, %138, %143 : vector<16x256xi1>, vector<16x256xf32>
    %145 = vector.extract_strided_slice %105 {offsets = [0, 15], sizes = [16, 241], strides = [1, 1]} : vector<16x256xf32> to vector<16x241xf32>
    %cst_51 = arith.constant 0.000000e+00 : f32
    %146 = vector.broadcast %cst_51 : f32 to vector<16x15xf32>
    %147 = tpu.concatenate %145, %146 in 1 : vector<16x241xf32>, vector<16x15xf32> -> vector<16x256xf32>
    %c1_i32_52 = arith.constant 1 : i32
    %148 = vector.broadcast %c1_i32_52 : i32 to vector<1x256xi32>
    %149 = arith.cmpi sge, %20, %148 : vector<1x256xi32>
    %cst_53 = arith.constant 0.000000e+00 : f32
    %150 = vector.shape_cast %149 : vector<1x256xi1> to vector<1x256xi1>
    %151 = vector.broadcast %150 : vector<1x256xi1> to vector<16x256xi1>
    %152 = vector.broadcast %cst_53 : f32 to vector<16x256xf32>
    %153 = arith.select %151, %147, %152 : vector<16x256xi1>, vector<16x256xf32>
    %154 = vector.extract_strided_slice %105 {offsets = [0, 16], sizes = [16, 240], strides = [1, 1]} : vector<16x256xf32> to vector<16x240xf32>
    %cst_54 = arith.constant 0.000000e+00 : f32
    %155 = vector.broadcast %cst_54 : f32 to vector<16x16xf32>
    %156 = tpu.concatenate %154, %155 in 1 : vector<16x240xf32>, vector<16x16xf32> -> vector<16x256xf32>
    %157 = vector.extract_strided_slice %105 {offsets = [0, 17], sizes = [16, 239], strides = [1, 1]} : vector<16x256xf32> to vector<16x239xf32>
    %cst_55 = arith.constant 0.000000e+00 : f32
    %158 = vector.broadcast %cst_55 : f32 to vector<16x17xf32>
    %159 = tpu.concatenate %157, %158 in 1 : vector<16x239xf32>, vector<16x17xf32> -> vector<16x256xf32>
    %c15_i32_56 = arith.constant 15 : i32
    %160 = vector.broadcast %c15_i32_56 : i32 to vector<1x256xi32>
    %161 = arith.cmpi slt, %20, %160 : vector<1x256xi32>
    %cst_57 = arith.constant 0.000000e+00 : f32
    %162 = vector.shape_cast %161 : vector<1x256xi1> to vector<1x256xi1>
    %163 = vector.broadcast %162 : vector<1x256xi1> to vector<16x256xi1>
    %164 = vector.broadcast %cst_57 : f32 to vector<16x256xf32>
    %165 = arith.select %163, %159, %164 : vector<16x256xi1>, vector<16x256xf32>
    %166 = tpu.concatenate %114, %117, %126, %135, %105, %144, %153, %156, %165 in 0 : vector<16x256xf32>, vector<16x256xf32>, vector<16x256xf32>, vector<16x256xf32>, vector<16x256xf32>, vector<16x256xf32>, vector<16x256xf32>, vector<16x256xf32>, vector<16x256xf32> -> vector<144x256xf32>
    %c0_58 = arith.constant 0 : index
    %c0_59 = arith.constant 0 : index
    %167 = vector.load %arg5[%c0_58, %c0_59] : memref<16x144xf32, #tpu.memory_space<vmem>>, vector<16x144xf32>
    %cst_60 = arith.constant dense<0.000000e+00> : vector<16x256xf32>
    %168 = tpu.matmul %167, %166, %cst_60 {dimension_numbers = #tpu.dot_dimension_numbers<[1], [0], [0], [1], [0, 0, 1, 1], [], []>} : vector<16x144xf32>, vector<144x256xf32>, vector<16x256xf32> -> vector<16x256xf32>
    %169 = vector.extract_strided_slice %85 {offsets = [32, 0], sizes = [16, 256], strides = [1, 1]} : vector<48x256xf32> to vector<16x256xf32>
    %170 = arith.addf %169, %168 : vector<16x256xf32>
    %c0_61 = arith.constant 0 : index
    %c0_62 = arith.constant 0 : index
    %171 = vector.load %arg7[%c0_61, %c0_62] : memref<16x1xf32, #tpu.memory_space<vmem>>, vector<16x1xf32>
    %172 = vector.broadcast %171 : vector<16x1xf32> to vector<16x256xf32>
    %173 = arith.addf %170, %172 : vector<16x256xf32>
    %174 = math.tanh %173 : vector<16x256xf32>
    %cst_63 = arith.constant 1.000000e+00 : f32
    %175 = vector.broadcast %cst_63 : f32 to vector<16x256xf32>
    %176 = arith.subf %175, %104 : vector<16x256xf32>
    %177 = arith.mulf %176, %3 : vector<16x256xf32>
    %178 = arith.mulf %104, %174 : vector<16x256xf32>
    %179 = arith.addf %177, %178 : vector<16x256xf32>
    %c0_64 = arith.constant 0 : index
    %c0_65 = arith.constant 0 : index
    %180 = vector.load %arg9[%c0_64, %c0_65] : memref<16x256xf32, #tpu.memory_space<vmem>>, vector<16x256xf32>
    tpu.vector_store %arg9[%c0_64, %c0_65], %179 {strides = array<i32>} : memref<16x256xf32, #tpu.memory_space<vmem>>, vector<16x256xf32>,
    %c0_66 = arith.constant 0 : index
    %c0_67 = arith.constant 0 : index
    %c0_68 = arith.constant 0 : index
    %c0_69 = arith.constant 0 : index
    %181 = vector.load %arg8[%c0_66, %c0_67, %c0_68, %c0_69] : memref<1x1x16x256xf32, #tpu.memory_space<vmem>>, vector<1x1x16x256xf32>
    %182 = vector.shape_cast %181 : vector<1x1x16x256xf32> to vector<16x256xf32>
    %183 = vector.shape_cast %179 : vector<16x256xf32> to vector<1x1x16x256xf32>
    tpu.vector_store %arg8[%c0_66, %c0_67, %c0_68, %c0_69], %183 {strides = array<i32>} : memref<1x1x16x256xf32, #tpu.memory_space<vmem>>, vector<1x1x16x256xf32>,
    return
  }
  func.func @transform_0(%arg0: i32, %arg1: i32) -> (i32, i32, i32, i32) {
    %c0_i32 = arith.constant 0 : i32
    %c0_i32_0 = arith.constant 0 : i32
    %c0_i32_1 = arith.constant 0 : i32
    return %arg0, %arg1, %c0_i32, %c0_i32_0 : i32, i32, i32, i32
  }
  func.func @transform_1(%arg0: i32, %arg1: i32) -> (i32, i32) {
    %c0_i32 = arith.constant 0 : i32
    %c0_i32_0 = arith.constant 0 : i32
    %c0_i32_1 = arith.constant 0 : i32
    return %c0_i32, %c0_i32_0 : i32, i32
  }
  func.func @transform_2(%arg0: i32, %arg1: i32) -> (i32, i32) {
    %c0_i32 = arith.constant 0 : i32
    %c0_i32_0 = arith.constant 0 : i32
    %c0_i32_1 = arith.constant 0 : i32
    return %c0_i32, %c0_i32_0 : i32, i32
  }
  func.func @transform_3(%arg0: i32, %arg1: i32) -> (i32, i32) {
    %c0_i32 = arith.constant 0 : i32
    %c0_i32_0 = arith.constant 0 : i32
    %c0_i32_1 = arith.constant 0 : i32
    return %c0_i32, %c0_i32_0 : i32, i32
  }
  func.func @transform_4(%arg0: i32, %arg1: i32) -> (i32, i32) {
    %c0_i32 = arith.constant 0 : i32
    %c0_i32_0 = arith.constant 0 : i32
    %c0_i32_1 = arith.constant 0 : i32
    return %c0_i32, %c0_i32_0 : i32, i32
  }
  func.func @transform_5(%arg0: i32, %arg1: i32) -> (i32, i32) {
    %c0_i32 = arith.constant 0 : i32
    %c0_i32_0 = arith.constant 0 : i32
    %c0_i32_1 = arith.constant 0 : i32
    return %c0_i32, %c0_i32_0 : i32, i32
  }
  func.func @transform_6(%arg0: i32, %arg1: i32) -> (i32, i32, i32, i32) {
    %c0_i32 = arith.constant 0 : i32
    %c0_i32_0 = arith.constant 0 : i32
    %c0_i32_1 = arith.constant 0 : i32
    return %arg0, %arg1, %c0_i32, %c0_i32_0 : i32, i32, i32, i32
  }
}

</mosaic_0001>

<bundles_post_ra>
// kernel: tpu_custom_call.1
= control target key start
LH: loop header
LB: loop body
LE: loop exit
PB: predicated region body
PF: predicated region fallthrough
CT: control target
= control target key end

     0   :  { %11 = vsyncpa [#allocation4], 0  ;;  %s2497_s0 = inlined_call_operand.hbm [shape: f32[2,4,40,256], index: 0, kind: input, shape index: {}]   ;;  %s2498_s1 = inlined_call_operand.vmem [shape: f32[48,40], index: 1, kind: input, shape index: {}]   ;;  %s2499_s2 = inlined_call_operand.vmem [shape: f32[32,144], index: 2, kind: input, shape index: {}]   ;;  %s2500_s3 = inlined_call_operand.vmem [shape: f32[16,144], index: 3, kind: input, shape index: {}]   ;;  %s2501_s4 = inlined_call_operand.vmem [shape: f32[32,1], index: 4, kind: input, shape index: {}]   ;;  %s2502_s5 = inlined_call_operand.vmem [shape: f32[16,1], index: 5, kind: input, shape index: {}]   ;;  %s2503_s6 = inlined_call_operand.hbm [shape: f32[2,4,16,256], index: 6, kind: output, shape index: {}]  }
   0x1   :  { %13 = vsyncpa [#allocation4 + $0x1], 0 }
   0x2   :  { %14 = vsyncpa [#allocation5], 0 }
   0x3   :  { %16 = vsyncpa [#allocation5 + $0x1], 0  ;;  %s1934_s21 = smov 0   ;;  %s1936_s22 = smov 0  }
   0x4   :  { %s1938_s23 = smov 0   ;;  %s1940_s24 = smov 0  }
   0x5   :  { %s1942_s25 = smov 0   ;;  %s1944_s26 = smov 0  }
   0x6   :  { %s1946_s27 = smov 0   ;;  %s1948_s28 = smov 0  }
   0x7 LB: > { %2515 = sst [smem:[#allocation9_spill]] %s1873_s26  ;;  %s1237_s29 = sadd.s32 4294967295, %s1881_s28   ;;  %s1881_s28 = sphi %s1948_s28, %s22_s28   ;;  %s1877_s27 = sphi %s1946_s27, %s2553_s27   ;;  %s1873_s26 = sphi %s1944_s26, %s2547_s26   ;;  %s1869_s25 = sphi %s1942_s25, %s2552_s25   ;;  %s1865_s24 = sphi %s1940_s24, %s2546_s24   ;;  %s1861_s23 = sphi %s1938_s23, %s2551_s23   ;;  %s1857_s22 = sphi %s1936_s22, %s2550_s22   ;;  %s1853_s21 = sphi %s1934_s21, %s2549_s21  }
   0x8   : > { %s1238_s30 = sadd.s32 4294967294, %s1881_s28   ;;  %s31_s7 = sadd.s32 1, %s1873_s26 }
   0x9   : > { %s34_s8 = sadd.s32 1, %s1877_s27  ;;  %p32_p0 = scmp.ge.s32.totalorder %s31_s7, 4 }
   0xa   : > { %s43_s9 = sadd.s32 1, %s1861_s23  ;;  %p50_p1 = scmp.ne.s32.totalorder %s1861_s23, %s1857_s22 }
   0xb   : > { %p51_p2 = scmp.eq.s32.totalorder %s1881_s28, 0  ;;  %s2555_s7 = smov (%p32_p0, %s31_s7), 0 }
   0xc   : > { %2516 = sst [smem:[#allocation10_spill]] %s2555_s7  ;;  %s2557_s8 = smov (!%p32_p0, %s34_s8), %s1877_s27 }
   0xd   : > { %s39_s10 = ssub.s32 %s1873_s26, %s2555_s7  ;;  %p1987_p3 = por %p51_p2, %p50_p1 }
   0xe   : > { %p36_p4 = scmp.ge.s32.totalorder %s2557_s8, 2  ;;  %p56_p5 = scmp.ne.s32.totalorder %s1857_s22, %s1853_s21 }
   0xf   : > { %p57_p6 = scmp.eq.s32.totalorder %s1237_s29, 0  ;;  %p187_p7 = scmp.eq.s32.totalorder %s1237_s29, 7 }
  0x10   : > { %s2559_s8 = smov (%p36_p4, %s2557_s8), 0  ;;  %p193_p10 = scmp.eq.s32.totalorder %s1238_s30, 7 }
  0x11   : > { %2518 = sst [smem:[#allocation11_spill]] %s2559_s8  ;;  %p1995_p8 = por %p57_p6, %p56_p5 }
  0x12   : > { %p1999_p9 = por %p187_p7, %p50_p1  ;;  %s38_s14 = ssub.s32 %s1877_s27, %s2559_s8 }
  0x13   : > { %s40_s15 = sor.u32 %s39_s10, %s38_s14  ;;  %p2005_p12 = por %p193_p10, %p56_p5 }
  0x14   : > { %s2520_s13 = scalar_select %p1999_p9, 1, 0 }
  0x15   : > { %p41_p11 = scmp.eq.s32.totalorder %s40_s15, 0  ;;  %p1467_p13 = scmp.lt.s32.totalorder %s1881_s28, 8 }
  0x16   : > { %s2521_s16 = scalar_select %p2005_p12, 1, 0 }
  0x17   : > { %s228_s17 = sand.u32 1, %s1861_s23   ;;  %s1452_s20 = smul.u32 10, %s1873_s26 }
  0x18   : > { %2522 = sst [smem:[#allocation12_spill]] %s2521_s16  ;;  %s1451_s19 = smul.u32 80, %s228_s17 }
  0x19   : > { %s2012_s18 = scalar_select %p41_p11, %s1861_s23, %s43_s9  }
  0x1a   : > { %p2017_p0 = pnand %p1467_p13, %p1987_p3  ;;  %s1453_s30 = smul.u32 40, %s1877_s27 }
  0x1b   : > { %s232_s10 = scalar_lea.vmem [#allocation3], %s1451_s19  ;;  %s2029_s11 = scalar_lea.sflag [#allocation4], %s228_s17 }
  0x1c   : > { %s241_s14 = sshll.u32 %s232_s10, 4  ;;  %s238_s15 = sadd.s32 %s1453_s30, %s1452_s20  ;;  %s2022_s14 = int_to_ptr.vmem [resolvable:$true] %s241_s14 }
  0x1d   : > { %s1241_s8 = sshll.u32 %s238_s15, 7  ;;  %p1755_p2 = pneg %p2017_p0 }
  0x1e   : > { %s2027_s9 = scalar_lea.hbm %s2497_s0, %s1241_s8  ;;  %s1758_s7 = scalar_lea.hbm %s2497_s0, 10240 }
  0x1f   : > { %s1753_s26 = scalar_lea.hbm %s2027_s9, 1280  ;;  %p1759_p5 = scmp.lt.u32.totalorder %s2027_s9, %s2497_s0 }
  0x20   : > { %p1754_p1 = scmp.ne.s32.totalorder %s2027_s9, %s1753_s26  ;;  %p1760_p6 = scmp.lt.u32.totalorder %s1758_s7, %s1753_s26 }
  0x21   : > { %p1762_p10 = scmp.lt.u32.totalorder %s1753_s26, %s2027_s9 }
  0x22   : > { %p1756_p3 = pnand %p1755_p2, %p1754_p1  ;;  %p1761_p7 = por %p1760_p6, %p1759_p5 }
  0x24   : > { %p1757_p4 = pneg %p1756_p3  ;;  %p1763_p11 = por %p1762_p10, %p1761_p7 }
  0x26   : > { %p1764_p13 = pnand %p1763_p11, %p1757_p4 }
  0x28   : > { %1767 = shalt.err (!%p1764_p13)
}
  0x29   : > { %s1768_s17 = scalar_lea.vmem %s2022_s14, 1280  ;;  %s1883_s30 = smov [#allocation3]  }
  0x2a   : > { %p1769_p1 = scmp.ne.s32.totalorder %s2022_s14, %s1768_s17  ;;  %s1773_s10 = sshll.u32 %s1883_s30, 4  ;;  %s1774_s10 = int_to_ptr.vmem [resolvable:$false] %s1773_s10 }
  0x2b   : > { %s1775_s15 = scalar_lea.vmem %s1774_s10, 2560  ;;  %p1776_p9 = scmp.lt.s32.totalorder %s2022_s14, %s1774_s10 }
  0x2c   : > { %p1771_p3 = pnand %p1769_p1, %p1755_p2  ;;  %p1777_p5 = scmp.lt.s32.totalorder %s1775_s15, %s1768_s17 }
  0x2e   : > { %p1772_p12 = pneg %p1771_p3  ;;  %p1778_p6 = por %p1777_p5, %p1776_p9 }
  0x30   : > { %p1779_p7 = pnand %p1778_p6, %p1772_p12 }
  0x32   : > { %1782 = shalt.err (!%p1779_p7)
}
  0x33   : > { %s1884_s26 = smov 256   ;;  %s1885_s19 = smov 16  }
  0x34   : > { %1462 = dma.hbm_to_vmem [thread:$0]  (!%p2017_p0), %s2027_s9, 1280, %s2022_s14, %s2029_s11, %s1884_s26, %s1884_s26, %s1885_s19  }
  0x35   : > { %p1242_p2 = scmp.ge.s32.totalorder %s1881_s28, 1  ;;  %p249_p4 = scmp.lt.s32.totalorder %s1881_s28, 9 }
  0x37   : > { %p250_p10 = pnand %p1242_p2, %p249_p4 }
  0x38   : > { %s2060_s20 = sand.u32 (!%p250_p10), 1, %s1857_s22  }
  0x39   : > { %253 = sbr.rel (%p250_p10) target bundleno = 893 (0x37d), region = 44  ;;  %s256_s8 = scalar_lea.sflag (!%p250_p10), [#allocation4], %s2060_s20 }
  0x3a   : > { %s1454_s7 = smul.u32 (!%p250_p10), 80, %s2060_s20 }
  0x3c   : > { %s2064_s16 = scalar_lea.vmem (!%p250_p10), [#allocation3], %s1454_s7 }
  0x40   : > { %1844 = dma.done.wait (%p1995_p8), %s256_s8, 1280  }
  0x41   : > { %1846 = vsyncadd (%p1995_p8), %s256_s8, 4294966016  ;;  %s1243_s29 = sshll.u32 %s2060_s20, 5  ;;  %p1244_p9 = scmp.ne.s32.totalorder %s1865_s24, 0 }
  0x42   : > { %s2071_s14 = scalar_lea.vmem [#allocation6], %s1243_s29  ;;  %v1886_v0 = vmov (!%p1244_p9), 0.0  }
  0x43   : > { %291 = sbr.rel (%p1244_p9) target bundleno = 74 (0x4a), region = 52  ;;  %292 = vst [vmem:[#allocation2] sm:$0xff] (!%p1244_p9), %v1886_v0  ;;  %293 = vst [vmem:[#allocation2 + $0x8] sm:$0xff] (!%p1244_p9), %v1886_v0 }
  0x44   : > { %294 = vst [vmem:[#allocation2 + $0x10] sm:$0xff] (!%p1244_p9), %v1886_v0  ;;  %295 = vst [vmem:[#allocation2 + $0x18] sm:$0xff] (!%p1244_p9), %v1886_v0 }
  0x4a PF: > { %v2074_v1 = vld [vmem:[#allocation2] sm:$0xff]  ;;  %v2076_v2 = vld [vmem:[#allocation2 + $0x8] sm:$0xff]  ;;  %s1887_s12 = smov 16   ;;  %s1888_s9 = smov 17   ;;  %vm519_vm0 = vcmask 326656   ;;  %vm366_vm1 = vcmask 130048   ;;  %v300_v32 = vlaneseq }
  0x4b   : > { %v2078_v3 = vld [vmem:[#allocation2 + $0x10] sm:$0xff]  ;;  %v1557_v4 = vpack.i.bf16 %v2076_v2, %v2074_v1  ;;  %v2082_v5 = vld [vmem:[#allocation2 + $0x18] sm:$0xff]  ;;  %s1889_s11 = smov 15   ;;  %s1890_s17 = smov 1   ;;  %v503_v23 = vld [vmem:[%s2498_s1] sm:$0xff]  ;;  %v1895_v25 = vmov 0.0  }
  0x4c   : > { %v1562_v6 = vpack.i.bf16 %v2082_v5, %v2078_v3  ;;  %v1592_v7 = vpack.i.bf16 %v2078_v3, %v2074_v1  ;;  %v1587_v8 = vpack.i.bf16 %v2082_v5, %v2076_v2  ;;  %s1891_s30 = smov 127   ;;  %v510_v9 = vld [vmem:[%s2064_s16 + $0x8] sm:$0xff]  ;;  %v512_v10 = vld [vmem:[%s2064_s16 + $0x18] sm:$0xff]  ;;  %v509_v12 = vld [vmem:[%s2064_s16] sm:$0xff]  ;;  %s2513_s10 = smov 113   ;;  %602 = vmatprep.mubr.f32.mxu0 %v1895_v25  ;;  %v1896_v29 = vmov 0  }
  0x4d   : > { %1558 = vrot.lane.b32.xlu1 %v1557_v4, %s1887_s12  ;;  %1548 = vrot.lane.b32.xlu0 %v1557_v4, %s1888_s9  ;;  %v1331_v11 = vpack.c.bf16 %v512_v10, %v510_v9  ;;  %v511_v13 = vld [vmem:[%s2064_s16 + $0x10] sm:$0xff]  ;;  %v514_v15 = vld [vmem:[%s2064_s16 + $0x28] sm:$0xff]  ;;  %s2511_s15 = smov 112   ;;  %s2509_s26 = smov 111   ;;  %v301_v33 = vand.u32 127, %v300_v32  ;;  %vm339_vm2 = vcmask 138240   ;;  %vm2162_vm8 = vmneg %vm366_vm1 }
  0x4e   : > { %v1333_v14 = vpack.c.bf16 %v511_v13, %v509_v12  ;;  %v516_v16 = vld [vmem:[%s2064_s16 + $0x38] sm:$0xff]  ;;  %v513_v18 = vld [vmem:[%s2064_s16 + $0x20] sm:$0xff]  ;;  %v515_v19 = vld [vmem:[%s2064_s16 + $0x30] sm:$0xff]  ;;  %1627 = vset.pattern.permute.xlu0 %v1896_v29  ;;  %1628 = vset.pattern.permute.xlu1 %v1896_v29  ;;  %vm383_vm7 = vcmask 121856   ;;  %vm410_vm10 = vcmask 7168   ;;  %vm431_vm15 = vcmask 1039360  }
  0x4f   : > { %1332 = vmatprep.subr.bf16.mxu0 %v1331_v11  ;;  %v1335_v17 = vpack.c.bf16 %v516_v16, %v514_v15  ;;  %v1337_v20 = vpack.c.bf16 %v515_v19, %v513_v18  ;;  %v518_v21 = vld [vmem:[%s2064_s16 + $0x48] sm:$0xff]  ;;  %v517_v22 = vld [vmem:[%s2064_s16 + $0x40] sm:$0xff]  ;;  %v302_v34 = vadd.s32 128, %v301_v33  ;;  %v307_v38 = vand.u32 15, %v301_v33  ;;  %vm1348_vm12 = vmpackc.low %vm2162_vm8, %vm2162_vm8  ;;  %s1326_s29 = sshll.u32 %s1865_s24, 2  ;;  %p2543_p12 = scmp.ne.s32.totalorder %s2520_s13, 0 }
  0x50   : > { %1334 = vmatpush1.bf16.msra.mxu0 %v1333_v14  ;;  %v640_v24 = vld [vmem:[%s2499_s2 + $0x8] sm:$0xff]  ;;  %v756_v27 = vld [vmem:[%s2501_s4] sm:$0xff]  ;;  %v505_v30 = vld [vmem:[%s2498_s1 + $0x10] sm:$0xff] }
  0x51   : > { %1563 = vrot.lane.b32.xlu1 %v1562_v6, %s1887_s12  ;;  %1553 = vrot.lane.b32.xlu0 %v1562_v6, %s1888_s9  ;;  %v504_v26 = vld [vmem:[%s2498_s1 + $0x8] sm:$0xff]  ;;  %v506_v31 = vld [vmem:[%s2498_s1 + $0x18] sm:$0xff]  ;;  %v314_v37 = vand.u32 15, %v302_v34  ;;  %vm348_vm4 = vcmp.ge.s32.totalorder %v307_v38, 1  ;;  %vm2176_vm11 = vcmp.lt.s32.totalorder %v307_v38, 15 }
  0x52   : > { %1336 = vmatprep.subr.bf16.mxu0 %v1335_v17  ;;  %1281 = vmatprep.mubr.msk.f32.mxu1 %vm366_vm1, %v640_v24  ;;  %v757_v28 = vld [vmem:[%s2501_s4 + $0x8] sm:$0xff]  ;;  %vm2157_vm6 = vmpackc.low %vm348_vm4, %vm348_vm4  ;;  %vm473_vm4 = vcmask 916480   ;;  %v996_v58 = vld [vmem:[%s2500_s3] sm:$0xff] }
  0x53   : > { %vm349_vm3 = vcmp.ge.s32.totalorder %v314_v37, 1  ;;  %vm2168_vm9 = vcmp.lt.s32.totalorder %v314_v37, 15  ;;  %vm2206_vm14 = vmpackc.low %vm2176_vm11, %vm2176_vm11  ;;  %v1362_v37 = vpack.c.bf16 %v2082_v5, %v2076_v2 }
  0x54   : > { %1338 = vmatpush1.bf16.msra.mxu0 %v1337_v20  ;;  %vm2151_vm5 = vmpackc.low %vm349_vm3, %vm349_vm3  ;;  %vm452_vm3 = vcmask 924672  }
  0x55   : > { %1573 = vrot.lane.b32.xlu1 %v1562_v6, %s1889_s11  ;;  %1568 = vrot.lane.b32.xlu0 %v1557_v4, %s1889_s11  ;;  %vm2188_vm13 = vmpackc.low %vm2168_vm9, %vm2168_vm9  ;;  %vm490_vm9 = vcmask 908288  }
  0x56   : > { %546 = vmatprep.subr.mxu0 %v518_v21  ;;  %vm2240_vm11 = vmpackc.low %vm473_vm4, %vm473_vm4  ;;  %v998_v21 = vld [vmem:[%s2500_s3 + $0x10] sm:$0xff] }
  0x58   : > { %547 = vmatpush1.msra.mxu0 %v517_v22 }
  0x59   : > { %1583 = vrot.lane.b32.xlu1 %v1562_v6, %s1890_s17  ;;  %1578 = vrot.lane.b32.xlu0 %v1557_v4, %s1890_s17 }
  0x5a   : > { %1245 = vmatmul.mubr.msk.f32.vlgmr.msra.gmra.mrb[0].mxu0 %vm519_vm0, %v503_v23 }
  0x5b   : > { %608 = vmatprep.mubr.f32.mxu0 %v1895_v25 }
  0x5d   : > { %1593 = vrot.lane.b32.xlu1 %v1592_v7, %s1891_s30  ;;  %1588 = vrot.lane.b32.xlu0 %v1587_v8, %s1891_s30 }
  0x5e   : > { %1246 = vmatmul.mubr.msk.f32.gmra.mrb[2].mxu0 %vm519_vm0, %v504_v26 }
  0x5f   : > { %614 = vmatprep.mubr.f32.mxu0 %v1895_v25 }
  0x61   : > { %1603 = vrot.lane.b32.xlu1 %v1592_v7, %s2513_s10  ;;  %1598 = vrot.lane.b32.xlu0 %v1587_v8, %s2513_s10  ;;  %s2541_s10 = smov 112  }
  0x62   : > { %1247 = vmatmul.mubr.msk.f32.gmra.mrb[4].mxu0 %vm519_vm0, %v505_v30 }
  0x63   : > { %620 = vmatprep.mubr.f32.mxu0 %v1895_v25 }
  0x65   : > { %1613 = vrot.lane.b32.xlu1 %v1562_v6, %s2511_s15  ;;  %1608 = vrot.lane.b32.xlu0 %v1557_v4, %s2511_s15  ;;  %s1132_s15 = scalar_lea.sflag [#allocation5], %s2060_s20 }
  0x66   : > { %1248 = vmatmul.mubr.msk.f32.gmra.mrb[6].mxu0 %vm519_vm0, %v506_v31 }
  0x67   : > { %626 = vmatprep.mubr.f32.mxu0 %v1895_v25 }
  0x69   : > { %1623 = vrot.lane.b32.xlu1 %v1592_v7, %s2509_s26  ;;  %1618 = vrot.lane.b32.xlu0 %v1587_v8, %s2509_s26  ;;  %s2540_s26 = smov 113  }
  0x6d   : > { %762 = vperm.xlu0 %1627, %v756_v27   ;;  %767 = vperm.xlu1 %1628, %v757_v28  }
  0xbf   : > { %v1559_v35 = vpop.permute.xlu1 %1558  ;;  %v1549_v36 = vpop.permute.xlu0 %1548 }
  0xc0   : > { %v1551_v39 = vunpack.i.h.bf16 %v1549_v36  ;;  %v1550_v40 = vunpack.i.l.bf16 %v1549_v36  ;;  %v1561_v41 = vunpack.i.h.bf16 %v1559_v35  ;;  %v1560_v42 = vunpack.i.l.bf16 %v1559_v35 }
  0xc2   : > { %v346_v49 = vsel %vm339_vm2, 0.0, %v1550_v40  ;;  %v340_v50 = vsel %vm339_vm2, %v1550_v40, %v1551_v39  ;;  %v367_v54 = vsel %vm366_vm1, %v1560_v42, %v1561_v41 }
  0xc3   : > { %v1564_v43 = vpop.permute.xlu1 %1563  ;;  %v1554_v44 = vpop.permute.xlu0 %1553 }
  0xc4   : > { %v1566_v45 = vunpack.i.h.bf16 %v1564_v43  ;;  %v1565_v46 = vunpack.i.l.bf16 %v1564_v43  ;;  %v1556_v47 = vunpack.i.h.bf16 %v1554_v44  ;;  %v1555_v48 = vunpack.i.l.bf16 %v1554_v44 }
  0xc5   : > { %v1364_v44 = vpack.c.bf16 %v2078_v3, %v2074_v1 }
  0xc6   : > { %v347_v51 = vsel %vm339_vm2, 0.0, %v1555_v48  ;;  %v341_v52 = vsel %vm339_vm2, %v1555_v48, %v1556_v47  ;;  %v368_v55 = vsel %vm366_vm1, %v1565_v46, %v1566_v45  ;;  %v1347_v11 = vpack.c.bf16 %v1565_v46, %v1560_v42 }
  0xc7   : > { %v1339_v56 = vpack.c.bf16 %v341_v52, %v340_v50  ;;  %v1342_v57 = vpack.c.bf16 %v347_v51, %v346_v49  ;;  %v1574_v59 = vpop.permute.xlu1 %1573  ;;  %v1569_v60 = vpop.permute.xlu0 %1568  ;;  %v1345_v6 = vpack.c.bf16 %v368_v55, %v367_v54 }
  0xc8   : > { %v1576_v61 = vunpack.i.h.bf16 %v1574_v59  ;;  %v1575_v62 = vunpack.i.l.bf16 %v1574_v59  ;;  %v1571_v63 = vunpack.i.h.bf16 %v1569_v60  ;;  %v1570_v0 = vunpack.i.l.bf16 %v1569_v60 }
  0xc9   : > { %1341 = vmatprep.subr.msk.bf16.mxu1 %vm2151_vm5, %v1339_v56 }
  0xca   : > { %1344 = vmatpush1.bf16.msk.msra.mxu1 %vm2157_vm6, %v1342_v57  ;;  %v385_v8 = vsel %vm383_vm7, %v1575_v62, %v1576_v61  ;;  %v384_v9 = vsel %vm383_vm7, %v1570_v0, %v1571_v63  ;;  %v391_v12 = vsel %vm383_vm7, 0.0, %v1575_v62  ;;  %v390_v13 = vsel %vm383_vm7, 0.0, %v1570_v0 }
  0xcb   : > { %v1350_v14 = vpack.c.bf16 %v385_v8, %v384_v9  ;;  %1346 = vmatprep.subr.bf16.mxu1 %v1345_v6  ;;  %v1584_v15 = vpop.permute.xlu1 %1583  ;;  %v1579_v16 = vpop.permute.xlu0 %1578  ;;  %v1353_v22 = vpack.c.bf16 %v391_v12, %v390_v13 }
  0xcc   : > { %v1586_v17 = vunpack.i.h.bf16 %v1584_v15  ;;  %v1585_v18 = vunpack.i.l.bf16 %v1584_v15  ;;  %v1581_v19 = vunpack.i.h.bf16 %v1579_v16  ;;  %v1580_v20 = vunpack.i.l.bf16 %v1579_v16 }
  0xce   : > { %1349 = vmatpush1.bf16.msk.msra.mxu1 %vm1348_vm12, %v1347_v11  ;;  %v412_v23 = vsel %vm410_vm10, %v1585_v18, %v1586_v17  ;;  %v411_v24 = vsel %vm410_vm10, %v1580_v20, %v1581_v19  ;;  %v418_v26 = vsel %vm410_vm10, 0.0, %v1585_v18  ;;  %v417_v27 = vsel %vm410_vm10, 0.0, %v1580_v20  ;;  %v999_v17 = vld [vmem:[%s2500_s3 + $0x18] sm:$0xff] }
  0xcf   : > { %v1356_v28 = vpack.c.bf16 %v412_v23, %v411_v24  ;;  %1352 = vmatprep.subr.msk.bf16.mxu1 %vm2188_vm13, %v1350_v14  ;;  %v1594_v30 = vpop.permute.xlu1 %1593  ;;  %v1589_v31 = vpop.permute.xlu0 %1588  ;;  %v1359_v34 = vpack.c.bf16 %v418_v26, %v417_v27  ;;  %v639_v24 = vld [vmem:[%s2499_s2] sm:$0xff]  ;;  %v642_v26 = vld [vmem:[%s2499_s2 + $0x18] sm:$0xff]  ;;  %v641_v27 = vld [vmem:[%s2499_s2 + $0x10] sm:$0xff] }
  0xd0   : > { %v1591_v32 = vunpack.i.h.bf16 %v1589_v31  ;;  %v1590_v33 = vunpack.i.l.bf16 %v1589_v31  ;;  %v1596_v35 = vunpack.i.h.bf16 %v1594_v30  ;;  %v1595_v36 = vunpack.i.l.bf16 %v1594_v30  ;;  %v643_v30 = vld [vmem:[%s2499_s2 + $0x20] sm:$0xff]  ;;  %v646_v31 = vld [vmem:[%s2499_s2 + $0x38] sm:$0xff] }
  0xd2   : > { %1355 = vmatpush1.bf16.msk.msra.mxu1 %vm2206_vm14, %v1353_v22  ;;  %v439_v40 = vsel %vm431_vm15, %v1591_v32, 0.0  ;;  %v438_v41 = vsel %vm431_vm15, %v1590_v33, 0.0  ;;  %v433_v46 = vsel %vm431_vm15, %v1596_v35, %v1591_v32  ;;  %v432_v47 = vsel %vm431_vm15, %v1595_v36, %v1590_v33  ;;  %v645_v32 = vld [vmem:[%s2499_s2 + $0x30] sm:$0xff] }
  0xd3   : > { %1358 = vmatprep.subr.msk.bf16.mxu1 %vm2151_vm5, %v1356_v28  ;;  %v1604_v38 = vpop.permute.xlu1 %1603  ;;  %v1599_v39 = vpop.permute.xlu0 %1598  ;;  %v1366_v48 = vpack.c.bf16 %v439_v40, %v438_v41  ;;  %v1369_v55 = vpack.c.bf16 %v433_v46, %v432_v47  ;;  %v644_v28 = vld [vmem:[%s2499_s2 + $0x28] sm:$0xff] }
  0xd4   : > { %v1601_v42 = vunpack.i.h.bf16 %v1599_v39  ;;  %v1600_v43 = vunpack.i.l.bf16 %v1599_v39  ;;  %v1606_v45 = vunpack.i.h.bf16 %v1604_v38  ;;  %v1605_v49 = vunpack.i.l.bf16 %v1604_v38 }
  0xd6   : > { %1361 = vmatpush1.bf16.msk.msra.mxu1 %vm2157_vm6, %v1359_v34  ;;  %v460_v52 = vsel %vm452_vm3, %v1601_v42, 0.0  ;;  %v459_v54 = vsel %vm452_vm3, %v1600_v43, 0.0  ;;  %v454_v56 = vsel %vm452_vm3, %v1606_v45, %v1601_v42  ;;  %v453_v60 = vsel %vm452_vm3, %v1605_v49, %v1600_v43 }
  0xd7   : > { %1363 = vmatprep.subr.bf16.mxu1 %v1362_v37  ;;  %v1614_v50 = vpop.permute.xlu1 %1613  ;;  %v1609_v51 = vpop.permute.xlu0 %1608  ;;  %v1372_v61 = vpack.c.bf16 %v460_v52, %v459_v54  ;;  %v1375_v9 = vpack.c.bf16 %v454_v56, %v453_v60 }
  0xd8   : > { %v1616_v57 = vunpack.i.h.bf16 %v1614_v50  ;;  %v1611_v59 = vunpack.i.h.bf16 %v1609_v51  ;;  %v1615_v62 = vunpack.i.l.bf16 %v1614_v50  ;;  %v1610_v63 = vunpack.i.l.bf16 %v1609_v51 }
  0xda   : > { %1365 = vmatpush1.bf16.msra.mxu1 %v1364_v44  ;;  %v1378_v10 = vpack.c.bf16 %v1616_v57, %v1611_v59  ;;  %v474_v13 = vsel %vm473_vm4, %v1610_v63, %v1611_v59  ;;  %v475_v14 = vsel %vm473_vm4, %v1615_v62, %v1616_v57 }
  0xdb   : > { %1368 = vmatprep.subr.msk.bf16.mxu1 %vm2188_vm13, %v1366_v48  ;;  %v1619_v0 = vpop.permute.xlu0 %1618  ;;  %v1624_v6 = vpop.permute.xlu1 %1623  ;;  %v1381_v18 = vpack.c.bf16 %v475_v14, %v474_v13 }
  0xdc   : > { %v1621_v7 = vunpack.i.h.bf16 %v1619_v0  ;;  %v1620_v8 = vunpack.i.l.bf16 %v1619_v0  ;;  %v1626_v11 = vunpack.i.h.bf16 %v1624_v6  ;;  %v1625_v12 = vunpack.i.l.bf16 %v1624_v6 }
  0xde   : > { %1371 = vmatpush1.bf16.msk.msra.mxu1 %vm2206_vm14, %v1369_v55  ;;  %v498_v15 = vsel %vm490_vm9, %v1621_v7, 0.0  ;;  %v497_v16 = vsel %vm490_vm9, %v1620_v8, 0.0  ;;  %v492_v19 = vsel %vm490_vm9, %v1626_v11, %v1621_v7  ;;  %v491_v20 = vsel %vm490_vm9, %v1625_v12, %v1620_v8 }
  0xdf   : > { %1374 = vmatprep.subr.msk.bf16.mxu1 %vm2151_vm5, %v1372_v61  ;;  %v1383_v22 = vpack.c.bf16 %v498_v15, %v497_v16  ;;  %v1386_v23 = vpack.c.bf16 %v492_v19, %v491_v20  ;;  %v508_v19 = vld [vmem:[%s2498_s1 + $0x28] sm:$0xff] }
  0xe2   : > { %1377 = vmatpush1.bf16.msk.msra.mxu1 %vm2157_vm6, %v1375_v9 }
  0xe3   : > { %1380 = vmatprep.subr.msk.bf16.mxu1 %vm2240_vm11, %v1378_v10 }
  0xe6   : > { %1382 = vmatpush1.bf16.msra.mxu1 %v1381_v18 }
  0xe7   : > { %1385 = vmatprep.subr.msk.bf16.mxu1 %vm2188_vm13, %v1383_v22 }
  0xea   : > { %1388 = vmatpush1.bf16.msk.msra.mxu1 %vm2206_vm14, %v1386_v23 }
  0xec   : > { %v763_v38 = vpop.permute.xlu0 %762  ;;  %v768_v45 = vpop.permute.xlu1 %767 }
  0xed   : > { %724 = vmatmul.mubr.f32.vlgmr.msra.gmra.mrb[0].mxu1 %v639_v24 }
  0xee   : > { %1282 = vmatprep.mubr.msk.f32.mxu1 %vm366_vm1, %v642_v26 }
  0xf1   : > { %730 = vmatmul.mubr.f32.gmra.mrb[2].mxu1 %v641_v27  ;;  %v997_v27 = vld [vmem:[%s2500_s3 + $0x8] sm:$0xff] }
  0xf2   : > { %1283 = vmatprep.mubr.msk.f32.mxu1 %vm366_vm1, %v644_v28  ;;  %v1087_v28 = vld [vmem:[%s2502_s5] sm:$0xff] }
  0xf5   : > { %736 = vmatmul.mubr.f32.gmra.mrb[4].mxu1 %v643_v30  ;;  %v759_v30 = vld [vmem:[%s2501_s4 + $0x18] sm:$0xff] }
  0xf6   : > { %1284 = vmatprep.mubr.msk.f32.mxu1 %vm366_vm1, %v646_v31 }
  0xf9   : > { %742 = vmatmul.mubr.f32.gmra.mrb[6].mxu1 %v645_v32 }
 0x12d   : > { %v604_v33 = vpop.f32.mrb[0].mxu0 }
 0x12e   : > { %v606_v34 = vpop.f32.mrb[1].mxu0 }
 0x131   : > { %v610_v35 = vpop.f32.mrb[2].mxu0 }
 0x132   : > { %v612_v36 = vpop.f32.mrb[3].mxu0 }
 0x135   : > { %v616_v18 = vpop.f32.mrb[4].mxu0 }
 0x136   : > { %v618_v23 = vpop.f32.mrb[5].mxu0 }
 0x139   : > { %v622_v31 = vpop.f32.mrb[6].mxu0 }
 0x1c0   : > { %v725_v37 = vpop.f32.mrb[0].mxu1 }
 0x1c1   : > { %v748_v39 = vadd.f32 %v725_v37, %v604_v33  ;;  %v727_v40 = vpop.f32.mrb[1].mxu1  ;;  %v624_v33 = vpop.f32.mrb[7].mxu0  ;;  %v1088_v37 = vld [vmem:[%s2502_s5 + $0x8] sm:$0xff] }
 0x1c2   : > { %v749_v41 = vadd.f32 %v727_v40, %v606_v34 }
 0x1c3   : > { %v780_v42 = vadd.f32 %v763_v38, %v748_v39 }
 0x1c4   : > { %v781_v43 = vadd.f32 %v763_v38, %v749_v41  ;;  %v731_v44 = vpop.f32.mrb[2].mxu1 }
 0x1c5   : > { %v1285_v46 = vmul.f32 -1.442695, %v780_v42  ;;  %v750_v47 = vadd.f32 %v731_v44, %v610_v35  ;;  %v733_v48 = vpop.f32.mrb[3].mxu1 }
 0x1c6   : > { %v1286_v49 = vmul.f32 -1.442695, %v781_v43  ;;  %v751_v50 = vadd.f32 %v733_v48, %v612_v36 }
 0x1c7   : > { %1709 = vpow2.f32 %v1285_v46  ;;  %v782_v51 = vadd.f32 %v768_v45, %v750_v47 }
 0x1c8   : > { %1711 = vpow2.f32 %v1286_v49  ;;  %v783_v52 = vadd.f32 %v768_v45, %v751_v50  ;;  %v737_v20 = vpop.f32.mrb[4].mxu1 }
 0x1c9   : > { %v1287_v54 = vmul.f32 -1.442695, %v782_v51  ;;  %v2324_v22 = vadd.f32 %v737_v20, %v616_v18  ;;  %v739_v24 = vpop.f32.mrb[5].mxu1 }
 0x1ca   : > { %v1288_v55 = vmul.f32 -1.442695, %v783_v52  ;;  %v2328_v26 = vadd.f32 %v739_v24, %v618_v23 }
 0x1cb   : > { %1713 = vpow2.f32 %v1287_v54 }
 0x1cc   : > { %1715 = vpow2.f32 %v1288_v55  ;;  %v743_v32 = vpop.f32.mrb[6].mxu1 }
 0x1cd   : > { %v745_v34 = vpop.f32.mrb[7].mxu1  ;;  %v2344_v35 = vadd.f32 %v743_v32, %v622_v31 }
 0x1ce   : > { %v2346_v36 = vadd.f32 %v745_v34, %v624_v33 }
 0x1d1   : > { %v1710_v56 = vpop.eup %1709 }
 0x1d2   : > { %v1712_v57 = vpop.eup %1711  ;;  %v800_v59 = vadd.f32 1.0, %v1710_v56 }
 0x1d3   : > { %v801_v60 = vadd.f32 1.0, %v1712_v57 }
 0x1d4   : > { %1717 = vrcp.f32 %v800_v59 }
 0x1d5   : > { %v1714_v61 = vpop.eup %1713  ;;  %1719 = vrcp.f32 %v801_v60 }
 0x1d6   : > { %v1716_v62 = vpop.eup %1715  ;;  %v802_v63 = vadd.f32 1.0, %v1714_v61 }
 0x1d7   : > { %v803_v0 = vadd.f32 1.0, %v1716_v62 }
 0x1d8   : > { %1721 = vrcp.f32 %v802_v63 }
 0x1d9   : > { %1723 = vrcp.f32 %v803_v0 }
 0x1de   : > { %v1718_v6 = vpop.eup %1717 }
 0x1df   : > { %v1720_v7 = vpop.eup %1719  ;;  %v2279_v8 = vmul.f32 %v1718_v6, %v2074_v1 }
 0x1e0   : > { %v2282_v9 = vmul.f32 %v1720_v7, %v2076_v2 }
 0x1e2   : > { %v1722_v10 = vpop.eup %1721  ;;  %v1629_v11 = vpack.i.bf16 %v2282_v9, %v2279_v8 }
 0x1e3   : > { %v1724_v12 = vpop.eup %1723  ;;  %v2287_v13 = vmul.f32 %v1722_v10, %v2078_v3 }
 0x1e4   : > { %v2290_v14 = vmul.f32 %v1724_v12, %v2082_v5  ;;  %1630 = vrot.lane.b32.xlu1 %v1629_v11, %s1888_s9  ;;  %v507_v5 = vld [vmem:[%s2498_s1 + $0x20] sm:$0xff] }
 0x1e5   : > { %v1669_v1 = vpack.i.bf16 %v2287_v13, %v2279_v8  ;;  %v1414_v2 = vpack.c.bf16 %v2287_v13, %v2279_v8  ;;  %1249 = vmatmul.mubr.msk.f32.gmra.mrb[8].mxu0 %vm519_vm0, %v507_v5 }
 0x1e6   : > { %v1649_v15 = vpack.i.bf16 %v2290_v14, %v2287_v13  ;;  %v1679_v16 = vpack.i.bf16 %v2290_v14, %v2282_v9  ;;  %v1412_v3 = vpack.c.bf16 %v2290_v14, %v2282_v9  ;;  %632 = vmatprep.mubr.f32.mxu0 %v1895_v25  ;;  %v758_v25 = vld [vmem:[%s2501_s4 + $0x10] sm:$0xff] }
 0x1e8   : > { %1635 = vrot.lane.b32.xlu1 %v1629_v11, %s1887_s12  ;;  %1650 = vrot.lane.b32.xlu0 %v1649_v15, %s1888_s9 }
 0x1e9   : > { %1250 = vmatmul.mubr.msk.f32.gmra.mrb[10].mxu0 %vm519_vm0, %v508_v19 }
 0x1ea   : > { %1323 = vmatprep.mubr.msk.f32.mxu0 %vm366_vm1, %v997_v27 }
 0x1ec   : > { %1640 = vrot.lane.b32.xlu1 %v1629_v11, %s1889_s11  ;;  %1655 = vrot.lane.b32.xlu0 %v1649_v15, %s1887_s12 }
 0x1f0   : > { %1645 = vrot.lane.b32.xlu1 %v1629_v11, %s1890_s17  ;;  %1660 = vrot.lane.b32.xlu0 %v1649_v15, %s1889_s11 }
 0x1f4   : > { %1680 = vrot.lane.b32.xlu1 %v1679_v16, %s1891_s30  ;;  %1665 = vrot.lane.b32.xlu0 %v1649_v15, %s1890_s17  ;;  %s2542_s17 = smov 111  }
 0x1f8   : > { %1685 = vrot.lane.b32.xlu1 %v1679_v16, %s2540_s26  ;;  %1670 = vrot.lane.b32.xlu0 %v1669_v1, %s1891_s30  ;;  %s1897_s30 = smov [#allocation6]  }
 0x1f9   : > { %s1787_s19 = sshll.u32 %s1897_s30, 4  ;;  %s1788_s19 = int_to_ptr.vmem [resolvable:$false] %s1787_s19 }
 0x1fa   : > { %s1789_s7 = scalar_lea.vmem %s1788_s19, 1024 }
 0x1fc   : > { %1690 = vrot.lane.b32.xlu1 %v1629_v11, %s2541_s10  ;;  %1675 = vrot.lane.b32.xlu0 %v1669_v1, %s2540_s26  ;;  %s1327_s26 = sshll.u32 %s1869_s25, 4  ;;  %s1147_s25 = sshll.u32 %s2071_s14, 4  ;;  %s2440_s25 = int_to_ptr.vmem [resolvable:$true] %s1147_s25 }
 0x1fd   : > { %s1144_s9 = sadd.s32 %s1327_s26, %s1326_s29  ;;  %p1790_p13 = scmp.lt.s32.totalorder %s2440_s25, %s1788_s19 }
 0x1fe   : > { %s1328_s24 = sshll.u32 %s1144_s9, 7 }
 0x1ff   : > { %s2438_s11 = scalar_lea.hbm %s2503_s6, %s1328_s24 }
 0x200   : > { %1700 = vrot.lane.b32.xlu1 %v1679_v16, %s2542_s17  ;;  %1695 = vrot.lane.b32.xlu0 %v1649_v15, %s2541_s10 }
 0x204   : > { %772 = vperm.xlu1 %1628, %v758_v25   ;;  %1705 = vrot.lane.b32.xlu0 %v1669_v1, %s2542_s17  ;;  %s1783_s17 = scalar_lea.vmem %s2440_s25, 512 }
 0x205   : > { %p1784_p8 = scmp.ne.s32.totalorder %s2440_s25, %s1783_s17  ;;  %p1791_p1 = scmp.lt.s32.totalorder %s1789_s7, %s1783_s17 }
 0x207   : > { %p1785_p0 = pnand %p1784_p8, %p2543_p12  ;;  %p1792_p3 = por %p1791_p1, %p1790_p13 }
 0x208   : > { %1091 = vperm.xlu1 %1628, %v1087_v28   ;;  %777 = vperm.xlu0 %1627, %v759_v30  }
 0x209   : > { %p1786_p11 = pneg %p1785_p0 }
 0x20b   : > { %p1793_p5 = pnand %p1792_p3, %p1786_p11 }
 0x20c   : > { %1096 = vperm.xlu0 %1627, %v1088_v37  }
 0x256   : > { %v1631_v38 = vpop.permute.xlu1 %1630 }
 0x257   : > { %v1633_v39 = vunpack.i.h.bf16 %v1631_v38  ;;  %v1632_v40 = vunpack.i.l.bf16 %v1631_v38 }
 0x259   : > { %v852_v45 = vsel %vm339_vm2, %v1632_v40, %v1633_v39  ;;  %v858_v46 = vsel %vm339_vm2, 0.0, %v1632_v40 }
 0x25a   : > { %v1636_v41 = vpop.permute.xlu1 %1635  ;;  %v1651_v42 = vpop.permute.xlu0 %1650 }
 0x25b   : > { %v1653_v43 = vunpack.i.h.bf16 %v1651_v42  ;;  %v1652_v44 = vunpack.i.l.bf16 %v1651_v42  ;;  %v1638_v47 = vunpack.i.h.bf16 %v1636_v41  ;;  %v1637_v48 = vunpack.i.l.bf16 %v1636_v41 }
 0x25d   : > { %v853_v49 = vsel %vm339_vm2, %v1652_v44, %v1653_v43  ;;  %v859_v50 = vsel %vm339_vm2, 0.0, %v1652_v44  ;;  %v872_v61 = vsel %vm366_vm1, %v1637_v48, %v1638_v47 }
 0x25e   : > { %v1389_v51 = vpack.c.bf16 %v853_v49, %v852_v45  ;;  %v1392_v52 = vpack.c.bf16 %v859_v50, %v858_v46  ;;  %v1641_v54 = vpop.permute.xlu1 %1640  ;;  %v1656_v55 = vpop.permute.xlu0 %1655 }
 0x25f   : > { %v1658_v56 = vunpack.i.h.bf16 %v1656_v55  ;;  %v1657_v57 = vunpack.i.l.bf16 %v1656_v55  ;;  %v1643_v59 = vunpack.i.h.bf16 %v1641_v54  ;;  %v1642_v60 = vunpack.i.l.bf16 %v1641_v54 }
 0x260   : > { %1391 = vmatprep.subr.msk.bf16.mxu0 %vm2151_vm5, %v1389_v51 }
 0x261   : > { %1394 = vmatpush1.bf16.msk.msra.mxu0 %vm2157_vm6, %v1392_v52  ;;  %v873_v62 = vsel %vm366_vm1, %v1657_v57, %v1658_v56  ;;  %v1397_v7 = vpack.c.bf16 %v1657_v57, %v1637_v48  ;;  %v888_v12 = vsel %vm383_vm7, %v1642_v60, %v1643_v59  ;;  %v894_v1 = vsel %vm383_vm7, 0.0, %v1642_v60 }
 0x262   : > { %v1646_v63 = vpop.permute.xlu1 %1645  ;;  %v1661_v0 = vpop.permute.xlu0 %1660  ;;  %v1395_v6 = vpack.c.bf16 %v873_v62, %v872_v61 }
 0x263   : > { %v1663_v10 = vunpack.i.h.bf16 %v1661_v0  ;;  %v1662_v11 = vunpack.i.l.bf16 %v1661_v0  ;;  %v1648_v15 = vunpack.i.h.bf16 %v1646_v63  ;;  %v1647_v16 = vunpack.i.l.bf16 %v1646_v63 }
 0x264   : > { %1396 = vmatprep.subr.bf16.mxu0 %v1395_v6 }
 0x265   : > { %v889_v5 = vsel %vm383_vm7, %v1662_v11, %v1663_v10  ;;  %v895_v18 = vsel %vm383_vm7, 0.0, %v1662_v11  ;;  %1399 = vmatpush1.bf16.msk.msra.mxu0 %vm1348_vm12, %v1397_v7  ;;  %v908_v31 = vsel %vm410_vm10, %v1647_v16, %v1648_v15  ;;  %v914_v32 = vsel %vm410_vm10, 0.0, %v1647_v16 }
 0x266   : > { %v1400_v19 = vpack.c.bf16 %v889_v5, %v888_v12  ;;  %v1403_v20 = vpack.c.bf16 %v895_v18, %v894_v1  ;;  %v1681_v23 = vpop.permute.xlu1 %1680  ;;  %v1666_v24 = vpop.permute.xlu0 %1665 }
 0x267   : > { %v1668_v25 = vunpack.i.h.bf16 %v1666_v24  ;;  %v1667_v27 = vunpack.i.l.bf16 %v1666_v24  ;;  %v1683_v28 = vunpack.i.h.bf16 %v1681_v23  ;;  %v1682_v30 = vunpack.i.l.bf16 %v1681_v23 }
 0x268   : > { %1402 = vmatprep.subr.msk.bf16.mxu0 %vm2188_vm13, %v1400_v19 }
 0x269   : > { %v909_v33 = vsel %vm410_vm10, %v1667_v27, %v1668_v25  ;;  %v915_v4 = vsel %vm410_vm10, 0.0, %v1667_v27  ;;  %1405 = vmatpush1.bf16.msk.msra.mxu0 %vm2206_vm14, %v1403_v20  ;;  %v935_v42 = vsel %vm431_vm15, %v1683_v28, 0.0  ;;  %v934_v43 = vsel %vm431_vm15, %v1682_v30, 0.0 }
 0x26a   : > { %v1406_v34 = vpack.c.bf16 %v909_v33, %v908_v31  ;;  %v1409_v37 = vpack.c.bf16 %v915_v4, %v914_v32  ;;  %v1686_v38 = vpop.permute.xlu1 %1685  ;;  %v1671_v39 = vpop.permute.xlu0 %1670  ;;  %v1416_v48 = vpack.c.bf16 %v935_v42, %v934_v43 }
 0x26b   : > { %v1688_v40 = vunpack.i.h.bf16 %v1686_v38  ;;  %v1687_v41 = vunpack.i.l.bf16 %v1686_v38  ;;  %v1673_v44 = vunpack.i.h.bf16 %v1671_v39  ;;  %v1672_v45 = vunpack.i.l.bf16 %v1671_v39 }
 0x26c   : > { %1408 = vmatprep.subr.msk.bf16.mxu0 %vm2151_vm5, %v1406_v34 }
 0x26d   : > { %1411 = vmatpush1.bf16.msk.msra.mxu0 %vm2157_vm6, %v1409_v37  ;;  %v955_v49 = vsel %vm452_vm3, %v1688_v40, 0.0  ;;  %v954_v50 = vsel %vm452_vm3, %v1687_v41, 0.0  ;;  %v929_v51 = vsel %vm431_vm15, %v1673_v44, %v1683_v28  ;;  %v928_v52 = vsel %vm431_vm15, %v1672_v45, %v1682_v30 }
 0x26e   : > { %v1691_v46 = vpop.permute.xlu1 %1690  ;;  %v1676_v47 = vpop.permute.xlu0 %1675  ;;  %1413 = vmatprep.subr.bf16.mxu0 %v1412_v3  ;;  %v1422_v9 = vpack.c.bf16 %v955_v49, %v954_v50  ;;  %v1419_v14 = vpack.c.bf16 %v929_v51, %v928_v52 }
 0x26f   : > { %v1678_v54 = vunpack.i.h.bf16 %v1676_v47  ;;  %v1677_v55 = vunpack.i.l.bf16 %v1676_v47  ;;  %v1693_v8 = vunpack.i.h.bf16 %v1691_v46  ;;  %v1692_v13 = vunpack.i.l.bf16 %v1691_v46 }
 0x271   : > { %1415 = vmatpush1.bf16.msra.mxu0 %v1414_v2  ;;  %v949_v3 = vsel %vm452_vm3, %v1678_v54, %v1688_v40  ;;  %v948_v59 = vsel %vm452_vm3, %v1677_v55, %v1687_v41  ;;  %v968_v15 = vsel %vm473_vm4, %v1692_v13, %v1693_v8 }
 0x272   : > { %v1701_v56 = vpop.permute.xlu1 %1700  ;;  %v1696_v57 = vpop.permute.xlu0 %1695  ;;  %1418 = vmatprep.subr.msk.bf16.mxu0 %vm2188_vm13, %v1416_v48  ;;  %v1425_v0 = vpack.c.bf16 %v949_v3, %v948_v59 }
 0x273   : > { %v1698_v60 = vunpack.i.h.bf16 %v1696_v57  ;;  %v1697_v61 = vunpack.i.l.bf16 %v1696_v57  ;;  %v1703_v62 = vunpack.i.h.bf16 %v1701_v56  ;;  %v1702_v63 = vunpack.i.l.bf16 %v1701_v56 }
 0x275   : > { %1421 = vmatpush1.bf16.msk.msra.mxu0 %vm2206_vm14, %v1419_v14  ;;  %v1428_v6 = vpack.c.bf16 %v1698_v60, %v1693_v8  ;;  %v969_v7 = vsel %vm473_vm4, %v1697_v61, %v1698_v60  ;;  %v991_v12 = vsel %vm490_vm9, %v1703_v62, 0.0  ;;  %v990_v1 = vsel %vm490_vm9, %v1702_v63, 0.0  ;;  %v1750_v60 = vld [vmem:[#allocation2 + $0x8] sm:$0xff] }
 0x276   : > { %v1706_v2 = vpop.permute.xlu0 %1705  ;;  %1424 = vmatprep.subr.msk.bf16.mxu0 %vm2151_vm5, %v1422_v9  ;;  %v1431_v53 = vpack.c.bf16 %v969_v7, %v968_v15  ;;  %v1433_v16 = vpack.c.bf16 %v991_v12, %v990_v1  ;;  %v1749_v9 = vld [vmem:[#allocation2] sm:$0xff] }
 0x277   : > { %v1708_v10 = vunpack.i.h.bf16 %v1706_v2  ;;  %v1707_v11 = vunpack.i.l.bf16 %v1706_v2 }
 0x279   : > { %1427 = vmatpush1.bf16.msk.msra.mxu0 %vm2157_vm6, %v1425_v0  ;;  %v985_v5 = vsel %vm490_vm9, %v1708_v10, %v1703_v62  ;;  %v984_v18 = vsel %vm490_vm9, %v1707_v11, %v1702_v63  ;;  %v1751_v0 = vld [vmem:[#allocation2 + $0x10] sm:$0xff]  ;;  %v1752_v10 = vld [vmem:[#allocation2 + $0x18] sm:$0xff] }
 0x27a   : > { %1430 = vmatprep.subr.msk.bf16.mxu0 %vm2240_vm11, %v1428_v6  ;;  %v1436_v19 = vpack.c.bf16 %v985_v5, %v984_v18 }
 0x27d   : > { %1432 = vmatpush1.bf16.msra.mxu0 %v1431_v53 }
 0x27e   : > { %1435 = vmatprep.subr.msk.bf16.mxu0 %vm2188_vm13, %v1433_v16 }
 0x281   : > { %1438 = vmatpush1.bf16.msk.msra.mxu0 %vm2206_vm14, %v1436_v19 }
 0x283   : > { %v773_v20 = vpop.permute.xlu1 %772 }
 0x284   : > { %1071 = vmatmul.mubr.f32.vlgmr.msra.gmra.mrb[8].mxu0 %v996_v58  ;;  %v784_v29 = vadd.f32 %v773_v20, %v2324_v22  ;;  %v785_v23 = vadd.f32 %v773_v20, %v2328_v26 }
 0x285   : > { %1324 = vmatprep.mubr.msk.f32.mxu0 %vm366_vm1, %v999_v17 }
 0x286   : > { %v1289_v25 = vmul.f32 -1.442695, %v784_v29  ;;  %v1290_v28 = vmul.f32 -1.442695, %v785_v23 }
 0x287   : > { %v778_v24 = vpop.permute.xlu0 %777 }
 0x288   : > { %1077 = vmatmul.mubr.f32.gmra.mrb[10].mxu0 %v998_v21  ;;  %v786_v27 = vadd.f32 %v778_v24, %v2344_v35  ;;  %v787_v30 = vadd.f32 %v778_v24, %v2346_v36  ;;  %1725 = vpow2.f32 %v1289_v25  ;;  %v1092_v35 = vpop.permute.xlu1 %1091 }
 0x289   : > { %1727 = vpow2.f32 %v1290_v28 }
 0x28a   : > { %v1291_v31 = vmul.f32 -1.442695, %v786_v27  ;;  %v1292_v32 = vmul.f32 -1.442695, %v787_v30 }
 0x28b   : > { %v1097_v43 = vpop.permute.xlu0 %1096 }
 0x28c   : > { %1729 = vpow2.f32 %v1291_v31 }
 0x28d   : > { %1731 = vpow2.f32 %v1292_v32 }
 0x292   : > { %v1726_v33 = vpop.eup %1725 }
 0x293   : > { %v1728_v4 = vpop.eup %1727  ;;  %v824_v34 = vadd.f32 1.0, %v1726_v33 }
 0x294   : > { %v825_v22 = vadd.f32 1.0, %v1728_v4 }
 0x295   : > { %1733 = vrcp.f32 %v824_v34 }
 0x296   : > { %v1730_v37 = vpop.eup %1729  ;;  %1735 = vrcp.f32 %v825_v22 }
 0x297   : > { %v1732_v38 = vpop.eup %1731  ;;  %v826_v26 = vadd.f32 1.0, %v1730_v37 }
 0x298   : > { %v827_v39 = vadd.f32 1.0, %v1732_v38 }
 0x299   : > { %1737 = vrcp.f32 %v826_v26 }
 0x29a   : > { %1739 = vrcp.f32 %v827_v39 }
 0x29f   : > { %v1734_v48 = vpop.eup %1733 }
 0x2a0   : > { %v1736_v49 = vpop.eup %1735  ;;  %v1107_v50 = vsub.f32 1.0, %v1734_v48 }
 0x2a1   : > { %v1108_v52 = vsub.f32 1.0, %v1736_v49 }
 0x2a2   : > { %v1111_v14 = vmul.f32 %v1749_v9, %v1107_v50 }
 0x2a3   : > { %v1738_v51 = vpop.eup %1737  ;;  %v1112_v61 = vmul.f32 %v1750_v60, %v1108_v52 }
 0x2a4   : > { %v1740_v54 = vpop.eup %1739  ;;  %v1109_v57 = vsub.f32 1.0, %v1738_v51 }
 0x2a5   : > { %v1110_v59 = vsub.f32 1.0, %v1740_v54 }
 0x2a6   : > { %v1113_v6 = vmul.f32 %v1751_v0, %v1109_v57 }
 0x2a7   : > { %v1114_v11 = vmul.f32 %v1752_v10, %v1110_v59 }
 0x357   : > { %v1072_v40 = vpop.f32.mrb[8].mxu0 }
 0x358   : > { %v1099_v36 = vadd.f32 %v1092_v35, %v1072_v40  ;;  %v1074_v41 = vpop.f32.mrb[9].mxu0 }
 0x359   : > { %v1100_v42 = vadd.f32 %v1092_v35, %v1074_v41 }
 0x35a   : > { %1741 = vtanh.f32 %v1099_v36 }
 0x35b   : > { %1743 = vtanh.f32 %v1100_v42  ;;  %v1078_v44 = vpop.f32.mrb[10].mxu0 }
 0x35c   : > { %v1101_v45 = vadd.f32 %v1097_v43, %v1078_v44  ;;  %v1080_v46 = vpop.f32.mrb[11].mxu0 }
 0x35d   : > { %v1102_v47 = vadd.f32 %v1097_v43, %v1080_v46 }
 0x35e   : > { %1745 = vtanh.f32 %v1101_v45 }
 0x35f   : > { %1747 = vtanh.f32 %v1102_v47 }
 0x364   : > { %v1742_v55 = vpop.eup %1741 }
 0x365   : > { %v1744_v56 = vpop.eup %1743  ;;  %v1115_v3 = vmul.f32 %v1742_v55, %v1734_v48 }
 0x366   : > { %v1116_v62 = vmul.f32 %v1744_v56, %v1736_v49 }
 0x367   : > { %v1119_v63 = vadd.f32 %v1115_v3, %v1111_v14 }
 0x368   : > { %v1746_v8 = vpop.eup %1745  ;;  %v1120_v13 = vadd.f32 %v1116_v62, %v1112_v61 }
 0x369   : > { %v1748_v2 = vpop.eup %1747  ;;  %1123 = vst [vmem:[#allocation2] sm:$0xff] %v1119_v63  ;;  %1127 = vst [vmem:[%s2071_s14] sm:$0xff] %v1119_v63  ;;  %v1117_v7 = vmul.f32 %v1746_v8, %v1738_v51 }
 0x36a   : > { %1124 = vst [vmem:[#allocation2 + $0x8] sm:$0xff] %v1120_v13  ;;  %1128 = vst [vmem:[%s2071_s14 + $0x8] sm:$0xff] %v1120_v13  ;;  %v1118_v12 = vmul.f32 %v1748_v2, %v1740_v54 }
 0x36b   : > { %v1121_v1 = vadd.f32 %v1117_v7, %v1113_v6 }
 0x36c   : > { %v1122_v15 = vadd.f32 %v1118_v12, %v1114_v11 }
 0x36d   : > { %1125 = vst [vmem:[#allocation2 + $0x10] sm:$0xff] %v1121_v1  ;;  %1129 = vst [vmem:[%s2071_s14 + $0x10] sm:$0xff] %v1121_v1 }
 0x36e   : > { %1126 = vst [vmem:[#allocation2 + $0x18] sm:$0xff] %v1122_v15  ;;  %1130 = vst [vmem:[%s2071_s14 + $0x18] sm:$0xff] %v1122_v15 }
 0x36f   : > { %1796 = shalt.err (!%p1793_p5)
}
 0x370   : > { %s1797_s14 = scalar_lea.hbm %s2438_s11, 512  ;;  %s1801_s26 = scalar_lea.hbm %s2503_s6, 4096 }
 0x371   : > { %p1798_p6 = scmp.ne.s32.totalorder %s2438_s11, %s1797_s14  ;;  %p1802_p4 = scmp.lt.u32.totalorder %s2438_s11, %s2503_s6 }
 0x372   : > { %p1803_p10 = scmp.lt.u32.totalorder %s1801_s26, %s1797_s14  ;;  %p1805_p8 = scmp.lt.u32.totalorder %s1797_s14, %s2438_s11 }
 0x373   : > { %p1799_p7 = pnand %p1798_p6, %p2543_p12 }
 0x374   : > { %p1804_p9 = por %p1803_p10, %p1802_p4 }
 0x375   : > { %p1800_p2 = pneg %p1799_p7 }
 0x376   : > { %p1806_p0 = por %p1805_p8, %p1804_p9 }
 0x378   : > { %p1807_p11 = pnand %p1806_p0, %p1800_p2 }
 0x37a   : > { %1810 = shalt.err (!%p1807_p11)
}
 0x37b   : > { %s1898_s16 = smov 256  }
 0x37c   : > { %1457 = dma.vmem_to_hbm [thread:$0]  (%p2543_p12), %s2440_s25, 512, %s2438_s11, %s1132_s15, %s1898_s16, %s1898_s16, %s1887_s12  }
 0x37d PF: > { %s2544_s10 = sld [smem:[#allocation12_spill]]  ;;  %p1468_p13 = scmp.ge.s32.totalorder %s1881_s28, 2 }
 0x37e   : > { %s1162_s17 = sand.u32 1, %s1853_s21  }
 0x37f   : > { %s1163_s30 = scalar_lea.sflag [#allocation5], %s1162_s17 }
 0x383   : > { %p2545_p1 = scmp.ne.s32.totalorder %s2544_s10, 0 }
 0x385   : > { %p1464_p3 = pnand %p1468_p13, %p2545_p1 }
 0x387   : > { %1848 = dma.done.wait (!%p1464_p3), %s1163_s30, 512  }
 0x388   : > { %1850 = vsyncadd (!%p1464_p3), %s1163_s30, 4294966784  ;;  %s22_s28 = sadd.s32 1, %s1881_s28   ;;  %s2546_s24 = sld [smem:[#allocation9_spill]] }
 0x389   : > { %p19_p5 = scmp.ge.s32.totalorder %s22_s28, 10   ;;  %s2547_s26 = sld [smem:[#allocation10_spill]] }
 0x38a   : > { %s2548_s13 = sld [smem:[#allocation11_spill]]  ;;  %s2549_s21 = smov %s1857_s22 }
 0x38b   : > { %s2550_s22 = smov %s1861_s23  ;;  %s2551_s23 = smov %s2012_s18 }
 0x38c   : > { %s2552_s25 = smov %s1877_s27  ;;  %21 = sbr.rel (!%p19_p5) target bundleno = 7 (0x7), region = 93 }
 0x390   : > { %s2553_s27 = smov %s2548_s13 }
 0x393   :  { %1168 = vsyncpa [#allocation4], 1 }
 0x394   :  { %1170 = vsyncpa [#allocation4 + $0x1], 1 }
 0x395   :  { %1171 = vsyncpa [#allocation5], 1 }
 0x396   :  { %1173 = vsyncpa [#allocation5 + $0x1], 1 }

</bundles_post_ra>
